<compile_context>
chip_gen: v5e
topology: v5e:2x2
jax: 0.10.0
libtpu: 0.0.40
codegen_flags: <defaults>
</compile_context>

<pallas_src>
import math
import functools

import jax
import jax.numpy as jnp
from jax import lax
from jax.experimental import pallas as pl
from jax.experimental.pallas import tpu as pltpu


# ----------------------------- fused kernel -----------------------------

def _decoder_stack_kernel(
    x_ref, mem_ref, skpad_ref, mkpad_ref, sbias_ref, cbias_ref,
    wq_s_ref, wk_s_ref, wv_s_ref, wo_s_ref,
    wq_c_ref, wk_c_ref, wv_c_ref, wo_c_ref,
    g1_ref, b1_ref, g2_ref, b2_ref, g3_ref, b3_ref,
    w1_ref, bb1_ref, w2_ref, bb2_ref,
    o_ref, *, n_head, n_layer):
    """One grid step = one batch element; the whole layer stack runs in VMEM."""
    Lq, D = x_ref.shape
    Lk = mem_ref.shape[0]
    dk = D // n_head
    scale = 1.0 / math.sqrt(dk)

    x = x_ref[...]                                  # [Lq, D] f32 residual stream
    mem_b = mem_ref[...].astype(jnp.bfloat16)       # [Lk, D] bf16

    # Fold per-batch key-padding bias into the batch-invariant attn-mask bias
    # ONCE per batch element; per-head/per-layer use is then one broadcast add.
    self_bias = sbias_ref[...] + skpad_ref[...]     # [Lq, Lq] f32
    cross_bias = cbias_ref[...] + mkpad_ref[...]    # [Lq, Lk] f32

    # Resident shared weights (bf16 for the MXU); LN params / biases in f32.
    wq_s = wq_s_ref[...]; wk_s = wk_s_ref[...]; wv_s = wv_s_ref[...]; wo_s = wo_s_ref[...]
    wq_c = wq_c_ref[...]; wk_c = wk_c_ref[...]; wv_c = wv_c_ref[...]; wo_c = wo_c_ref[...]
    g1 = g1_ref[...]; b1 = b1_ref[...]
    g2 = g2_ref[...]; b2 = b2_ref[...]
    g3 = g3_ref[...]; b3 = b3_ref[...]
    w1 = w1_ref[...]; bb1 = bb1_ref[...]
    w2 = w2_ref[...]; bb2 = bb2_ref[...]

    def head_proj(z_bf16, w_hm):
        # z: [L, D] bf16, w_hm: [n_head, D, dk] bf16 -> [n_head, L, dk] f32.
        # Output is directly head-major, so no head slicing / relayout is needed.
        zh = jnp.broadcast_to(z_bf16[None], (n_head,) + z_bf16.shape)
        return jnp.einsum('hld,hdk->hlk', zh, w_hm,
                          preferred_element_type=jnp.float32)

    # Cross-attn K/V depend only on shared weights + encoder memory: compute once.
    kc = head_proj(mem_b, wk_c).astype(jnp.bfloat16)   # [n_head, Lk, dk]
    vc = head_proj(mem_b, wv_c).astype(jnp.bfloat16)   # [n_head, Lk, dk]

    def layer_norm(z, g, b):                            # all f32
        mean = jnp.mean(z, axis=-1, keepdims=True)
        var = jnp.mean((z - mean) ** 2, axis=-1, keepdims=True)
        return (z - mean) * lax.rsqrt(var + 1e-5) * g + b

    def mha(q_hm, k_hm, v_hm, bias, wo_hm):
        # q: [h, Lq, dk] bf16; k/v: [h, Lkv, dk] bf16; bias: [Lq, Lkv] f32.
        s = jnp.einsum('hqd,hkd->hqk', q_hm, k_hm,
                       preferred_element_type=jnp.float32)
        s = s * scale + bias[None, :, :]
        m = jnp.max(s, axis=-1, keepdims=True)
        p = jnp.exp(s - m)                                          # f32
        inv = pl.reciprocal(jnp.sum(p, axis=-1, keepdims=True), approx=True)
        ctx = jnp.einsum('hqk,hkd->hqd', p.astype(jnp.bfloat16), v_hm,
                         preferred_element_type=jnp.float32)
        ctx = (ctx * inv).astype(jnp.bfloat16)        # normalize AFTER PV (smaller)
        out_h = jnp.einsum('hqd,hdm->hqm', ctx, wo_hm,
                           preferred_element_type=jnp.float32)
        return jnp.sum(out_h, axis=0)                 # == concat(ctx) @ WO, [Lq, D]

    # All layers share identical parameters (ModuleList of deep copies of one
    # initialized layer). fori_loop keeps register pressure bounded per layer.
    def layer_body(_, xc):
        # --- self-attention ---
        xb = xc.astype(jnp.bfloat16)
        q = head_proj(xb, wq_s).astype(jnp.bfloat16)
        k = head_proj(xb, wk_s).astype(jnp.bfloat16)
        v = head_proj(xb, wv_s).astype(jnp.bfloat16)
        xc = layer_norm(xc + mha(q, k, v, self_bias, wo_s), g1, b1)

        # --- cross-attention (K/V precomputed from memory) ---
        xb = xc.astype(jnp.bfloat16)
        qc = head_proj(xb, wq_c).astype(jnp.bfloat16)
        xc = layer_norm(xc + mha(qc, kc, vc, cross_bias, wo_c), g2, b2)

        # --- feed-forward ---
        # TODO(synk): tile along d_ff at production sizes (v7x 64 MiB VMEM).
        xb = xc.astype(jnp.bfloat16)
        h1 = jnp.maximum(
            jnp.dot(xb, w1, preferred_element_type=jnp.float32) + bb1, 0.0)
        ff = jnp.dot(h1.astype(jnp.bfloat16), w2,
                     preferred_element_type=jnp.float32) + bb2
        return layer_norm(xc + ff, g3, b3)

    x = lax.fori_loop(0, n_layer, layer_body, x)
    o_ref[...] = x.astype(o_ref.dtype)


# ----------------------------- host-side glue -----------------------------

def _head_major(w, n_head):
    """[D, n_head*dk] -> [n_head, D, dk] (bf16), head h == original cols h*dk:(h+1)*dk."""
    din, dout = w.shape
    dk = dout // n_head
    return jnp.transpose(w.reshape(din, n_head, dk), (1, 0, 2)).astype(jnp.bfloat16)


def _head_major_out(wo, n_head):
    """[n_head*dk, D] -> [n_head, dk, D] (bf16), head h == original rows h*dk:(h+1)*dk."""
    din, dout = wo.shape
    dk = din // n_head
    return wo.reshape(n_head, dk, dout).astype(jnp.bfloat16)


def _build_mask_bias(attn_mask, Lq, Lk):
    """Batch-invariant additive bias [Lq, Lk]: float mask added, bool mask -> -1e9."""
    bias = jnp.zeros((Lq, Lk), jnp.float32)
    if attn_mask is not None:
        am = jnp.asarray(attn_mask)
        if jnp.issubdtype(am.dtype, jnp.floating):
            bias = bias + am.astype(jnp.float32)
        else:
            bias = jnp.where(am != 0, jnp.float32(-1e9), bias)
    return bias


def _build_kpad_bias(key_padding_mask, B, Lk):
    """Per-batch additive key-padding bias [B, 1, Lk] (0 or -1e9)."""
    if key_padding_mask is None:
        return jnp.zeros((B, 1, Lk), jnp.float32)
    kp = jnp.asarray(key_padding_mask)
    return jnp.where((kp != 0)[:, None, :], jnp.float32(-1e9),
                     jnp.float32(0.0)).astype(jnp.float32)


def _vmem_limit_bytes():
    """Generation-aware VMEM cap: ~85% of per-core capacity (v5e/v6e ~109MiB, v7x ~54MiB)."""
    cap = 128 * 1024 * 1024
    try:
        cap = int(pltpu.get_tpu_info().vmem_capacity_bytes)
    except Exception:
        pass
    return max(32 * 1024 * 1024, int(cap * 0.85))


def decoder_forward(x, enc_output, params, n_head, n_layer,
                    tgt_mask=None, tgt_key_padding_mask=None,
                    memory_mask=None, memory_key_padding_mask=None):
    B, Lq, D = x.shape
    Lk = enc_output.shape[1]
    assert D % n_head == 0

    self_bias2d = _build_mask_bias(tgt_mask, Lq, Lq)            # [Lq, Lq]
    cross_bias2d = _build_mask_bias(memory_mask, Lq, Lk)        # [Lq, Lk]
    self_kpad = _build_kpad_bias(tgt_key_padding_mask, B, Lq)   # [B, 1, Lq]
    mem_kpad = _build_kpad_bias(memory_key_padding_mask, B, Lk) # [B, 1, Lk]

    sa, ca = params["self_attn"], params["cross_attn"]
    row32 = lambda v: v.reshape(1, -1).astype(jnp.float32)
    d_ff = params["w1"].shape[1]

    weights = [
        _head_major(sa["wq"], n_head), _head_major(sa["wk"], n_head),
        _head_major(sa["wv"], n_head), _head_major_out(sa["wo"], n_head),
        _head_major(ca["wq"], n_head), _head_major(ca["wk"], n_head),
        _head_major(ca["wv"], n_head), _head_major_out(ca["wo"], n_head),
        row32(params["g1"]), row32(params["b1"]),
        row32(params["g2"]), row32(params["b2"]),
        row32(params["g3"]), row32(params["b3"]),
        params["w1"].astype(jnp.bfloat16), row32(params["bb1"]),
        params["w2"].astype(jnp.bfloat16), row32(params["bb2"]),
    ]

    kernel = functools.partial(_decoder_stack_kernel, n_head=n_head, n_layer=n_layer)

    # Whole-array, non-pipelined VMEM residency (single-buffered constants).
    vmem_full = pl.BlockSpec(memory_space=pltpu.MemorySpace.VMEM)
    in_specs = [
        pl.BlockSpec((None, Lq, D), lambda b: (b, 0, 0)),    # x          (per batch)
        pl.BlockSpec((None, Lk, D), lambda b: (b, 0, 0)),    # memory     (per batch)
        pl.BlockSpec((None, 1, Lq), lambda b: (b, 0, 0)),    # self key-pad bias
        pl.BlockSpec((None, 1, Lk), lambda b: (b, 0, 0)),    # cross key-pad bias
        vmem_full,                                           # self attn-mask bias
        vmem_full,                                           # cross attn-mask bias
    ] + [vmem_full] * len(weights)

    # Advisory cost estimate so XLA schedules surrounding ops around the call.
    flops = B * (n_layer * (6 * 2 * Lq * D * D        # q/k/v/o projections (x2 attn)
                            + 4 * Lq * Lq * D         # self QK^T + PV
                            + 4 * Lq * Lk * D         # cross QK^T + PV
                            + 4 * Lq * D * d_ff)      # FFN
                 + 4 * Lk * D * D)                    # cross K/V precompute
    transcendentals = B * n_layer * n_head * (Lq * Lq + Lq * Lk)
    bytes_accessed = (sum(int(a.size) * a.dtype.itemsize for a in
                          [x, enc_output, self_bias2d, cross_bias2d,
                           self_kpad, mem_kpad] + weights)
                      + B * Lq * D * 4)

    return pl.pallas_call(
        kernel,
        out_shape=jax.ShapeDtypeStruct((B, Lq, D), jnp.float32),
        grid=(B,),                                   # B>=2 keeps both v7x TCs busy
        in_specs=in_specs,
        out_specs=pl.BlockSpec((None, Lq, D), lambda b: (b, 0, 0)),
        compiler_params=pltpu.CompilerParams(
            dimension_semantics=("parallel",),
            vmem_limit_bytes=_vmem_limit_bytes(),
        ),
        cost_estimate=pl.CostEstimate(flops=flops,
                                      transcendentals=transcendentals,
                                      bytes_accessed=bytes_accessed),
    )(x, enc_output, self_kpad, mem_kpad, self_bias2d, cross_bias2d, *weights)


# ----------------------------- parameter init -----------------------------

def init_params(key, d_model, n_head, d_ff):
    def lin(key, din, dout):
        bound = 1.0 / math.sqrt(din)
        return jax.random.uniform(key, (din, dout), jnp.float32, -bound, bound)

    keys = jax.random.split(key, 12)

    def attn_params(ks):
        return {"wq": lin(ks[0], d_model, d_model),
                "wk": lin(ks[1], d_model, d_model),
                "wv": lin(ks[2], d_model, d_model),
                "wo": lin(ks[3], d_model, d_model)}

    return {
        "self_attn": attn_params(keys[0:4]),
        "cross_attn": attn_params(keys[4:8]),
        "g1": jnp.ones((d_model,), jnp.float32), "b1": jnp.zeros((d_model,), jnp.float32),
        "g2": jnp.ones((d_model,), jnp.float32), "b2": jnp.zeros((d_model,), jnp.float32),
        "g3": jnp.ones((d_model,), jnp.float32), "b3": jnp.zeros((d_model,), jnp.float32),
        "w1": lin(keys[8], d_model, d_ff),
        "bb1": jax.random.uniform(keys[9], (d_ff,), jnp.float32,
                                  -1.0 / math.sqrt(d_model), 1.0 / math.sqrt(d_model)),
        "w2": lin(keys[10], d_ff, d_model),
        "bb2": jax.random.uniform(keys[11], (d_model,), jnp.float32,
                                  -1.0 / math.sqrt(d_ff), 1.0 / math.sqrt(d_ff)),
    }


# ----------------------------- main -----------------------------

if __name__ == "__main__":
    d_model, n_head, d_ff, n_layer = 32, 4, 64, 2
    B, Lq, Lk = 2, 8, 10

    root = jax.random.PRNGKey(0)
    k_param, k_x, k_mem = jax.random.split(root, 3)
    params = init_params(k_param, d_model, n_head, d_ff)

    x = jax.random.normal(k_x, (B, Lq, d_model), jnp.float32)
    enc_output = jax.random.normal(k_mem, (B, Lk, d_model), jnp.float32)

    # Causal (bool) target mask + memory key-padding mask on the last 2 positions.
    idx = jnp.arange(Lq)
    tgt_mask = idx[None, :] > idx[:, None]                       # [Lq, Lq] bool
    memory_key_padding_mask = jnp.zeros((B, Lk), jnp.bool_).at[:, Lk - 2:].set(True)

    fwd = jax.jit(functools.partial(decoder_forward, n_head=n_head, n_layer=n_layer))
    out = fwd(x, enc_output, params, tgt_mask=tgt_mask,
              memory_key_padding_mask=memory_key_padding_mask)
    out = jax.block_until_ready(out)
    assert out.shape == (B, Lq, d_model)
    assert bool(jnp.all(jnp.isfinite(out)))
    print("KERNEL_OK")
</pallas_src>

<mosaic_0001>
module attributes {stable_mosaic.version = 11 : i64} {
  func.func @_decoder_stack_kernel(%arg0: i32, %arg1: memref<1x8x32xf32, #tpu.memory_space<vmem>>, %arg2: memref<1x10x32xf32, #tpu.memory_space<vmem>>, %arg3: memref<1x1x8xf32, #tpu.memory_space<vmem>>, %arg4: memref<1x1x10xf32, #tpu.memory_space<vmem>>, %arg5: memref<8x8xf32, #tpu.memory_space<vmem>>, %arg6: memref<8x10xf32, #tpu.memory_space<vmem>>, %arg7: memref<4x32x8xbf16, #tpu.memory_space<vmem>>, %arg8: memref<4x32x8xbf16, #tpu.memory_space<vmem>>, %arg9: memref<4x32x8xbf16, #tpu.memory_space<vmem>>, %arg10: memref<4x8x32xbf16, #tpu.memory_space<vmem>>, %arg11: memref<4x32x8xbf16, #tpu.memory_space<vmem>>, %arg12: memref<4x32x8xbf16, #tpu.memory_space<vmem>>, %arg13: memref<4x32x8xbf16, #tpu.memory_space<vmem>>, %arg14: memref<4x8x32xbf16, #tpu.memory_space<vmem>>, %arg15: memref<1x32xf32, #tpu.memory_space<vmem>>, %arg16: memref<1x32xf32, #tpu.memory_space<vmem>>, %arg17: memref<1x32xf32, #tpu.memory_space<vmem>>, %arg18: memref<1x32xf32, #tpu.memory_space<vmem>>, %arg19: memref<1x32xf32, #tpu.memory_space<vmem>>, %arg20: memref<1x32xf32, #tpu.memory_space<vmem>>, %arg21: memref<32x64xbf16, #tpu.memory_space<vmem>>, %arg22: memref<1x64xf32, #tpu.memory_space<vmem>>, %arg23: memref<64x32xbf16, #tpu.memory_space<vmem>>, %arg24: memref<1x32xf32, #tpu.memory_space<vmem>>, %arg25: memref<1x8x32xf32, #tpu.memory_space<vmem>>) attributes {dimension_semantics = [#tpu.dimension_semantics<parallel>], iteration_bounds = array<i64: 2>, scalar_prefetch = 0 : i64, scratch_operands = 0 : i64, tpu.core_type = #tpu.core_type<tc>, window_params = [{transform_indices = @transform_0, window_bounds = array<i64: 1, 8, 32>}, {transform_indices = @transform_1, window_bounds = array<i64: 1, 10, 32>}, {transform_indices = @transform_2, window_bounds = array<i64: 1, 1, 8>}, {transform_indices = @transform_3, window_bounds = array<i64: 1, 1, 10>}, {pipeline_mode = #tpu.pipeline_mode<synchronous>, transform_indices = @transform_4, window_bounds = array<i64: 8, 8>}, {pipeline_mode = #tpu.pipeline_mode<synchronous>, transform_indices = @transform_5, window_bounds = array<i64: 8, 10>}, {pipeline_mode = #tpu.pipeline_mode<synchronous>, transform_indices = @transform_6, window_bounds = array<i64: 4, 32, 8>}, {pipeline_mode = #tpu.pipeline_mode<synchronous>, transform_indices = @transform_7, window_bounds = array<i64: 4, 32, 8>}, {pipeline_mode = #tpu.pipeline_mode<synchronous>, transform_indices = @transform_8, window_bounds = array<i64: 4, 32, 8>}, {pipeline_mode = #tpu.pipeline_mode<synchronous>, transform_indices = @transform_9, window_bounds = array<i64: 4, 8, 32>}, {pipeline_mode = #tpu.pipeline_mode<synchronous>, transform_indices = @transform_10, window_bounds = array<i64: 4, 32, 8>}, {pipeline_mode = #tpu.pipeline_mode<synchronous>, transform_indices = @transform_11, window_bounds = array<i64: 4, 32, 8>}, {pipeline_mode = #tpu.pipeline_mode<synchronous>, transform_indices = @transform_12, window_bounds = array<i64: 4, 32, 8>}, {pipeline_mode = #tpu.pipeline_mode<synchronous>, transform_indices = @transform_13, window_bounds = array<i64: 4, 8, 32>}, {pipeline_mode = #tpu.pipeline_mode<synchronous>, transform_indices = @transform_14, window_bounds = array<i64: 1, 32>}, {pipeline_mode = #tpu.pipeline_mode<synchronous>, transform_indices = @transform_15, window_bounds = array<i64: 1, 32>}, {pipeline_mode = #tpu.pipeline_mode<synchronous>, transform_indices = @transform_16, window_bounds = array<i64: 1, 32>}, {pipeline_mode = #tpu.pipeline_mode<synchronous>, transform_indices = @transform_17, window_bounds = array<i64: 1, 32>}, {pipeline_mode = #tpu.pipeline_mode<synchronous>, transform_indices = @transform_18, window_bounds = array<i64: 1, 32>}, {pipeline_mode = #tpu.pipeline_mode<synchronous>, transform_indices = @transform_19, window_bounds = array<i64: 1, 32>}, {pipeline_mode = #tpu.pipeline_mode<synchronous>, transform_indices = @transform_20, window_bounds = array<i64: 32, 64>}, {pipeline_mode = #tpu.pipeline_mode<synchronous>, transform_indices = @transform_21, window_bounds = array<i64: 1, 64>}, {pipeline_mode = #tpu.pipeline_mode<synchronous>, transform_indices = @transform_22, window_bounds = array<i64: 64, 32>}, {pipeline_mode = #tpu.pipeline_mode<synchronous>, transform_indices = @transform_23, window_bounds = array<i64: 1, 32>}, {transform_indices = @transform_24, window_bounds = array<i64: 1, 8, 32>}]} {
    %c0 = arith.constant 0 : index
    %c0_0 = arith.constant 0 : index
    %c0_1 = arith.constant 0 : index
    %0 = vector.load %arg1[%c0, %c0_0, %c0_1] : memref<1x8x32xf32, #tpu.memory_space<vmem>>, vector<1x8x32xf32>
    %1 = vector.shape_cast %0 : vector<1x8x32xf32> to vector<8x32xf32>
    %c0_2 = arith.constant 0 : index
    %c0_3 = arith.constant 0 : index
    %c0_4 = arith.constant 0 : index
    %2 = vector.load %arg2[%c0_2, %c0_3, %c0_4] : memref<1x10x32xf32, #tpu.memory_space<vmem>>, vector<1x10x32xf32>
    %3 = vector.shape_cast %2 : vector<1x10x32xf32> to vector<10x32xf32>
    %4 = arith.truncf %3 : vector<10x32xf32> to vector<10x32xbf16>
    %c0_5 = arith.constant 0 : index
    %c0_6 = arith.constant 0 : index
    %5 = vector.load %arg5[%c0_5, %c0_6] : memref<8x8xf32, #tpu.memory_space<vmem>>, vector<8x8xf32>
    %c0_7 = arith.constant 0 : index
    %c0_8 = arith.constant 0 : index
    %c0_9 = arith.constant 0 : index
    %6 = vector.load %arg3[%c0_7, %c0_8, %c0_9] : memref<1x1x8xf32, #tpu.memory_space<vmem>>, vector<1x1x8xf32>
    %7 = vector.shape_cast %6 : vector<1x1x8xf32> to vector<1x8xf32>
    %8 = vector.broadcast %7 : vector<1x8xf32> to vector<8x8xf32>
    %9 = arith.addf %5, %8 : vector<8x8xf32>
    %c0_10 = arith.constant 0 : index
    %c0_11 = arith.constant 0 : index
    %10 = vector.load %arg6[%c0_10, %c0_11] : memref<8x10xf32, #tpu.memory_space<vmem>>, vector<8x10xf32>
    %c0_12 = arith.constant 0 : index
    %c0_13 = arith.constant 0 : index
    %c0_14 = arith.constant 0 : index
    %11 = vector.load %arg4[%c0_12, %c0_13, %c0_14] : memref<1x1x10xf32, #tpu.memory_space<vmem>>, vector<1x1x10xf32>
    %12 = vector.shape_cast %11 : vector<1x1x10xf32> to vector<1x10xf32>
    %13 = vector.broadcast %12 : vector<1x10xf32> to vector<8x10xf32>
    %14 = arith.addf %10, %13 : vector<8x10xf32>
    %c0_15 = arith.constant 0 : index
    %c0_16 = arith.constant 0 : index
    %c0_17 = arith.constant 0 : index
    %15 = vector.load %arg7[%c0_15, %c0_16, %c0_17] : memref<4x32x8xbf16, #tpu.memory_space<vmem>>, vector<4x32x8xbf16>
    %c0_18 = arith.constant 0 : index
    %c0_19 = arith.constant 0 : index
    %c0_20 = arith.constant 0 : index
    %16 = vector.load %arg8[%c0_18, %c0_19, %c0_20] : memref<4x32x8xbf16, #tpu.memory_space<vmem>>, vector<4x32x8xbf16>
    %c0_21 = arith.constant 0 : index
    %c0_22 = arith.constant 0 : index
    %c0_23 = arith.constant 0 : index
    %17 = vector.load %arg9[%c0_21, %c0_22, %c0_23] : memref<4x32x8xbf16, #tpu.memory_space<vmem>>, vector<4x32x8xbf16>
    %c0_24 = arith.constant 0 : index
    %c0_25 = arith.constant 0 : index
    %c0_26 = arith.constant 0 : index
    %18 = vector.load %arg10[%c0_24, %c0_25, %c0_26] : memref<4x8x32xbf16, #tpu.memory_space<vmem>>, vector<4x8x32xbf16>
    %c0_27 = arith.constant 0 : index
    %c0_28 = arith.constant 0 : index
    %c0_29 = arith.constant 0 : index
    %19 = vector.load %arg11[%c0_27, %c0_28, %c0_29] : memref<4x32x8xbf16, #tpu.memory_space<vmem>>, vector<4x32x8xbf16>
    %c0_30 = arith.constant 0 : index
    %c0_31 = arith.constant 0 : index
    %c0_32 = arith.constant 0 : index
    %20 = vector.load %arg12[%c0_30, %c0_31, %c0_32] : memref<4x32x8xbf16, #tpu.memory_space<vmem>>, vector<4x32x8xbf16>
    %c0_33 = arith.constant 0 : index
    %c0_34 = arith.constant 0 : index
    %c0_35 = arith.constant 0 : index
    %21 = vector.load %arg13[%c0_33, %c0_34, %c0_35] : memref<4x32x8xbf16, #tpu.memory_space<vmem>>, vector<4x32x8xbf16>
    %c0_36 = arith.constant 0 : index
    %c0_37 = arith.constant 0 : index
    %c0_38 = arith.constant 0 : index
    %22 = vector.load %arg14[%c0_36, %c0_37, %c0_38] : memref<4x8x32xbf16, #tpu.memory_space<vmem>>, vector<4x8x32xbf16>
    %c0_39 = arith.constant 0 : index
    %c0_40 = arith.constant 0 : index
    %23 = vector.load %arg15[%c0_39, %c0_40] : memref<1x32xf32, #tpu.memory_space<vmem>>, vector<1x32xf32>
    %c0_41 = arith.constant 0 : index
    %c0_42 = arith.constant 0 : index
    %24 = vector.load %arg16[%c0_41, %c0_42] : memref<1x32xf32, #tpu.memory_space<vmem>>, vector<1x32xf32>
    %c0_43 = arith.constant 0 : index
    %c0_44 = arith.constant 0 : index
    %25 = vector.load %arg17[%c0_43, %c0_44] : memref<1x32xf32, #tpu.memory_space<vmem>>, vector<1x32xf32>
    %c0_45 = arith.constant 0 : index
    %c0_46 = arith.constant 0 : index
    %26 = vector.load %arg18[%c0_45, %c0_46] : memref<1x32xf32, #tpu.memory_space<vmem>>, vector<1x32xf32>
    %c0_47 = arith.constant 0 : index
    %c0_48 = arith.constant 0 : index
    %27 = vector.load %arg19[%c0_47, %c0_48] : memref<1x32xf32, #tpu.memory_space<vmem>>, vector<1x32xf32>
    %c0_49 = arith.constant 0 : index
    %c0_50 = arith.constant 0 : index
    %28 = vector.load %arg20[%c0_49, %c0_50] : memref<1x32xf32, #tpu.memory_space<vmem>>, vector<1x32xf32>
    %c0_51 = arith.constant 0 : index
    %c0_52 = arith.constant 0 : index
    %29 = vector.load %arg21[%c0_51, %c0_52] : memref<32x64xbf16, #tpu.memory_space<vmem>>, vector<32x64xbf16>
    %c0_53 = arith.constant 0 : index
    %c0_54 = arith.constant 0 : index
    %30 = vector.load %arg22[%c0_53, %c0_54] : memref<1x64xf32, #tpu.memory_space<vmem>>, vector<1x64xf32>
    %c0_55 = arith.constant 0 : index
    %c0_56 = arith.constant 0 : index
    %31 = vector.load %arg23[%c0_55, %c0_56] : memref<64x32xbf16, #tpu.memory_space<vmem>>, vector<64x32xbf16>
    %c0_57 = arith.constant 0 : index
    %c0_58 = arith.constant 0 : index
    %32 = vector.load %arg24[%c0_57, %c0_58] : memref<1x32xf32, #tpu.memory_space<vmem>>, vector<1x32xf32>
    %33 = vector.shape_cast %4 : vector<10x32xbf16> to vector<1x10x32xbf16>
    %34 = vector.shape_cast %33 : vector<1x10x32xbf16> to vector<1x10x32xbf16>
    %35 = vector.broadcast %34 : vector<1x10x32xbf16> to vector<4x10x32xbf16>
    "tpu.trace_start"() <{level = 10 : i32, message = "hld,hdk->hlk"}> : () -> ()
    %cst = arith.constant dense<0.000000e+00> : vector<4x10x8xf32>
    %36 = tpu.matmul %35, %20, %cst {dimension_numbers = #tpu.dot_dimension_numbers<[2], [1], [1], [2], [0, 0, 0, 1, 1, 2], [0], [0]>} : vector<4x10x32xbf16>, vector<4x32x8xbf16>, vector<4x10x8xf32> -> vector<4x10x8xf32>
    "tpu.trace_stop"() : () -> ()
    %37 = arith.truncf %36 : vector<4x10x8xf32> to vector<4x10x8xbf16>
    %38 = vector.shape_cast %4 : vector<10x32xbf16> to vector<1x10x32xbf16>
    %39 = vector.shape_cast %38 : vector<1x10x32xbf16> to vector<1x10x32xbf16>
    %40 = vector.broadcast %39 : vector<1x10x32xbf16> to vector<4x10x32xbf16>
    "tpu.trace_start"() <{level = 10 : i32, message = "hld,hdk->hlk"}> : () -> ()
    %cst_59 = arith.constant dense<0.000000e+00> : vector<4x10x8xf32>
    %41 = tpu.matmul %40, %21, %cst_59 {dimension_numbers = #tpu.dot_dimension_numbers<[2], [1], [1], [2], [0, 0, 0, 1, 1, 2], [0], [0]>} : vector<4x10x32xbf16>, vector<4x32x8xbf16>, vector<4x10x8xf32> -> vector<4x10x8xf32>
    "tpu.trace_stop"() : () -> ()
    %42 = arith.truncf %41 : vector<4x10x8xf32> to vector<4x10x8xbf16>
    %c0_i32 = arith.constant 0 : i32
    %c2_i32 = arith.constant 2 : i32
    %43 = arith.addi %c0_i32, %c2_i32 : i32
    %c1_i32 = arith.constant 1 : i32
    %44 = scf.for %arg26 = %c0_i32 to %43 step %c1_i32 iter_args(%arg27 = %1) -> (vector<8x32xf32>)  : i32 {
      %48 = arith.truncf %arg27 : vector<8x32xf32> to vector<8x32xbf16>
      %49 = vector.shape_cast %48 : vector<8x32xbf16> to vector<1x8x32xbf16>
      %50 = vector.shape_cast %49 : vector<1x8x32xbf16> to vector<1x8x32xbf16>
      %51 = vector.broadcast %50 : vector<1x8x32xbf16> to vector<4x8x32xbf16>
      "tpu.trace_start"() <{level = 10 : i32, message = "hld,hdk->hlk"}> : () -> ()
      %cst_63 = arith.constant dense<0.000000e+00> : vector<4x8x8xf32>
      %52 = tpu.matmul %51, %15, %cst_63 {dimension_numbers = #tpu.dot_dimension_numbers<[2], [1], [1], [2], [0, 0, 0, 1, 1, 2], [0], [0]>} : vector<4x8x32xbf16>, vector<4x32x8xbf16>, vector<4x8x8xf32> -> vector<4x8x8xf32>
      "tpu.trace_stop"() : () -> ()
      %53 = arith.truncf %52 : vector<4x8x8xf32> to vector<4x8x8xbf16>
      %54 = vector.shape_cast %48 : vector<8x32xbf16> to vector<1x8x32xbf16>
      %55 = vector.shape_cast %54 : vector<1x8x32xbf16> to vector<1x8x32xbf16>
      %56 = vector.broadcast %55 : vector<1x8x32xbf16> to vector<4x8x32xbf16>
      "tpu.trace_start"() <{level = 10 : i32, message = "hld,hdk->hlk"}> : () -> ()
      %cst_64 = arith.constant dense<0.000000e+00> : vector<4x8x8xf32>
      %57 = tpu.matmul %56, %16, %cst_64 {dimension_numbers = #tpu.dot_dimension_numbers<[2], [1], [1], [2], [0, 0, 0, 1, 1, 2], [0], [0]>} : vector<4x8x32xbf16>, vector<4x32x8xbf16>, vector<4x8x8xf32> -> vector<4x8x8xf32>
      "tpu.trace_stop"() : () -> ()
      %58 = arith.truncf %57 : vector<4x8x8xf32> to vector<4x8x8xbf16>
      %59 = vector.shape_cast %48 : vector<8x32xbf16> to vector<1x8x32xbf16>
      %60 = vector.shape_cast %59 : vector<1x8x32xbf16> to vector<1x8x32xbf16>
      %61 = vector.broadcast %60 : vector<1x8x32xbf16> to vector<4x8x32xbf16>
      "tpu.trace_start"() <{level = 10 : i32, message = "hld,hdk->hlk"}> : () -> ()
      %cst_65 = arith.constant dense<0.000000e+00> : vector<4x8x8xf32>
      %62 = tpu.matmul %61, %17, %cst_65 {dimension_numbers = #tpu.dot_dimension_numbers<[2], [1], [1], [2], [0, 0, 0, 1, 1, 2], [0], [0]>} : vector<4x8x32xbf16>, vector<4x32x8xbf16>, vector<4x8x8xf32> -> vector<4x8x8xf32>
      "tpu.trace_stop"() : () -> ()
      %63 = arith.truncf %62 : vector<4x8x8xf32> to vector<4x8x8xbf16>
      "tpu.trace_start"() <{level = 10 : i32, message = "hqd,hkd->hqk"}> : () -> ()
      %cst_66 = arith.constant dense<0.000000e+00> : vector<4x8x8xf32>
      %64 = tpu.matmul %53, %58, %cst_66 {dimension_numbers = #tpu.dot_dimension_numbers<[2], [2], [1], [1], [0, 0, 0, 1, 1, 1], [0], [0]>} : vector<4x8x8xbf16>, vector<4x8x8xbf16>, vector<4x8x8xf32> -> vector<4x8x8xf32>
      "tpu.trace_stop"() : () -> ()
      %cst_67 = arith.constant 0.353553385 : f32
      %65 = vector.broadcast %cst_67 : f32 to vector<4x8x8xf32>
      %66 = arith.mulf %64, %65 : vector<4x8x8xf32>
      %67 = vector.shape_cast %9 : vector<8x8xf32> to vector<1x8x8xf32>
      %68 = vector.broadcast %67 : vector<1x8x8xf32> to vector<4x8x8xf32>
      %69 = arith.addf %66, %68 : vector<4x8x8xf32>
      %cst_68 = arith.constant dense<0xFF800000> : vector<4x8xf32>
      %70 = vector.multi_reduction <maximumf>, %69, %cst_68 [2] : vector<4x8x8xf32> to vector<4x8xf32>
      %71 = vector.shape_cast %70 : vector<4x8xf32> to vector<4x8x1xf32>
      %72 = vector.broadcast %71 : vector<4x8x1xf32> to vector<4x8x8xf32>
      %73 = arith.subf %69, %72 : vector<4x8x8xf32>
      %74 = math.exp %73 : vector<4x8x8xf32>
      %cst_69 = arith.constant dense<0.000000e+00> : vector<4x8xf32>
      %75 = vector.multi_reduction <add>, %74, %cst_69 [2] : vector<4x8x8xf32> to vector<4x8xf32>
      %76 = vector.shape_cast %75 : vector<4x8xf32> to vector<4x8x1xf32>
      %77 = tpu.reciprocal %76 {approx = true} : vector<4x8x1xf32> -> vector<4x8x1xf32>
      %78 = arith.truncf %74 : vector<4x8x8xf32> to vector<4x8x8xbf16>
      "tpu.trace_start"() <{level = 10 : i32, message = "hqk,hkd->hqd"}> : () -> ()
      %cst_70 = arith.constant dense<0.000000e+00> : vector<4x8x8xf32>
      %79 = tpu.matmul %78, %63, %cst_70 {dimension_numbers = #tpu.dot_dimension_numbers<[2], [1], [1], [2], [0, 0, 0, 1, 1, 2], [0], [0]>} : vector<4x8x8xbf16>, vector<4x8x8xbf16>, vector<4x8x8xf32> -> vector<4x8x8xf32>
      "tpu.trace_stop"() : () -> ()
      %80 = vector.broadcast %77 : vector<4x8x1xf32> to vector<4x8x8xf32>
      %81 = arith.mulf %79, %80 : vector<4x8x8xf32>
      %82 = arith.truncf %81 : vector<4x8x8xf32> to vector<4x8x8xbf16>
      "tpu.trace_start"() <{level = 10 : i32, message = "hqd,hdm->hqm"}> : () -> ()
      %cst_71 = arith.constant dense<0.000000e+00> : vector<4x8x32xf32>
      %83 = tpu.matmul %82, %18, %cst_71 {dimension_numbers = #tpu.dot_dimension_numbers<[2], [1], [1], [2], [0, 0, 0, 1, 1, 2], [0], [0]>} : vector<4x8x8xbf16>, vector<4x8x32xbf16>, vector<4x8x32xf32> -> vector<4x8x32xf32>
      "tpu.trace_stop"() : () -> ()
      %cst_72 = arith.constant dense<0.000000e+00> : vector<8x32xf32>
      %84 = vector.multi_reduction <add>, %83, %cst_72 [0] : vector<4x8x32xf32> to vector<8x32xf32>
      %85 = arith.addf %arg27, %84 : vector<8x32xf32>
      %cst_73 = arith.constant dense<0.000000e+00> : vector<8xf32>
      %86 = vector.multi_reduction <add>, %85, %cst_73 [1] : vector<8x32xf32> to vector<8xf32>
      %87 = vector.shape_cast %86 : vector<8xf32> to vector<8x1xf32>
      %cst_74 = arith.constant 3.200000e+01 : f32
      %88 = vector.broadcast %cst_74 : f32 to vector<8x1xf32>
      %89 = arith.divf %87, %88 : vector<8x1xf32>
      %90 = vector.broadcast %89 : vector<8x1xf32> to vector<8x32xf32>
      %91 = arith.subf %85, %90 : vector<8x32xf32>
      %92 = arith.mulf %91, %91 : vector<8x32xf32>
      %cst_75 = arith.constant dense<0.000000e+00> : vector<8xf32>
      %93 = vector.multi_reduction <add>, %92, %cst_75 [1] : vector<8x32xf32> to vector<8xf32>
      %94 = vector.shape_cast %93 : vector<8xf32> to vector<8x1xf32>
      %cst_76 = arith.constant 3.200000e+01 : f32
      %95 = vector.broadcast %cst_76 : f32 to vector<8x1xf32>
      %96 = arith.divf %94, %95 : vector<8x1xf32>
      %97 = vector.broadcast %89 : vector<8x1xf32> to vector<8x32xf32>
      %98 = arith.subf %85, %97 : vector<8x32xf32>
      %cst_77 = arith.constant 9.99999974E-6 : f32
      %99 = vector.broadcast %cst_77 : f32 to vector<8x1xf32>
      %100 = arith.addf %96, %99 : vector<8x1xf32>
      %101 = math.rsqrt %100 : vector<8x1xf32>
      %102 = vector.broadcast %101 : vector<8x1xf32> to vector<8x32xf32>
      %103 = arith.mulf %98, %102 : vector<8x32xf32>
      %104 = vector.broadcast %23 : vector<1x32xf32> to vector<8x32xf32>
      %105 = arith.mulf %103, %104 : vector<8x32xf32>
      %106 = vector.broadcast %24 : vector<1x32xf32> to vector<8x32xf32>
      %107 = arith.addf %105, %106 : vector<8x32xf32>
      %108 = arith.truncf %107 : vector<8x32xf32> to vector<8x32xbf16>
      %109 = vector.shape_cast %108 : vector<8x32xbf16> to vector<1x8x32xbf16>
      %110 = vector.shape_cast %109 : vector<1x8x32xbf16> to vector<1x8x32xbf16>
      %111 = vector.broadcast %110 : vector<1x8x32xbf16> to vector<4x8x32xbf16>
      "tpu.trace_start"() <{level = 10 : i32, message = "hld,hdk->hlk"}> : () -> ()
      %cst_78 = arith.constant dense<0.000000e+00> : vector<4x8x8xf32>
      %112 = tpu.matmul %111, %19, %cst_78 {dimension_numbers = #tpu.dot_dimension_numbers<[2], [1], [1], [2], [0, 0, 0, 1, 1, 2], [0], [0]>} : vector<4x8x32xbf16>, vector<4x32x8xbf16>, vector<4x8x8xf32> -> vector<4x8x8xf32>
      "tpu.trace_stop"() : () -> ()
      %113 = arith.truncf %112 : vector<4x8x8xf32> to vector<4x8x8xbf16>
      "tpu.trace_start"() <{level = 10 : i32, message = "hqd,hkd->hqk"}> : () -> ()
      %cst_79 = arith.constant dense<0.000000e+00> : vector<4x8x10xf32>
      %114 = tpu.matmul %113, %37, %cst_79 {dimension_numbers = #tpu.dot_dimension_numbers<[2], [2], [1], [1], [0, 0, 0, 1, 1, 1], [0], [0]>} : vector<4x8x8xbf16>, vector<4x10x8xbf16>, vector<4x8x10xf32> -> vector<4x8x10xf32>
      "tpu.trace_stop"() : () -> ()
      %cst_80 = arith.constant 0.353553385 : f32
      %115 = vector.broadcast %cst_80 : f32 to vector<4x8x10xf32>
      %116 = arith.mulf %114, %115 : vector<4x8x10xf32>
      %117 = vector.shape_cast %14 : vector<8x10xf32> to vector<1x8x10xf32>
      %118 = vector.broadcast %117 : vector<1x8x10xf32> to vector<4x8x10xf32>
      %119 = arith.addf %116, %118 : vector<4x8x10xf32>
      %cst_81 = arith.constant dense<0xFF800000> : vector<4x8xf32>
      %120 = vector.multi_reduction <maximumf>, %119, %cst_81 [2] : vector<4x8x10xf32> to vector<4x8xf32>
      %121 = vector.shape_cast %120 : vector<4x8xf32> to vector<4x8x1xf32>
      %122 = vector.broadcast %121 : vector<4x8x1xf32> to vector<4x8x10xf32>
      %123 = arith.subf %119, %122 : vector<4x8x10xf32>
      %124 = math.exp %123 : vector<4x8x10xf32>
      %cst_82 = arith.constant dense<0.000000e+00> : vector<4x8xf32>
      %125 = vector.multi_reduction <add>, %124, %cst_82 [2] : vector<4x8x10xf32> to vector<4x8xf32>
      %126 = vector.shape_cast %125 : vector<4x8xf32> to vector<4x8x1xf32>
      %127 = tpu.reciprocal %126 {approx = true} : vector<4x8x1xf32> -> vector<4x8x1xf32>
      %128 = arith.truncf %124 : vector<4x8x10xf32> to vector<4x8x10xbf16>
      "tpu.trace_start"() <{level = 10 : i32, message = "hqk,hkd->hqd"}> : () -> ()
      %cst_83 = arith.constant dense<0.000000e+00> : vector<4x8x8xf32>
      %129 = tpu.matmul %128, %42, %cst_83 {dimension_numbers = #tpu.dot_dimension_numbers<[2], [1], [1], [2], [0, 0, 0, 1, 1, 2], [0], [0]>} : vector<4x8x10xbf16>, vector<4x10x8xbf16>, vector<4x8x8xf32> -> vector<4x8x8xf32>
      "tpu.trace_stop"() : () -> ()
      %130 = vector.broadcast %127 : vector<4x8x1xf32> to vector<4x8x8xf32>
      %131 = arith.mulf %129, %130 : vector<4x8x8xf32>
      %132 = arith.truncf %131 : vector<4x8x8xf32> to vector<4x8x8xbf16>
      "tpu.trace_start"() <{level = 10 : i32, message = "hqd,hdm->hqm"}> : () -> ()
      %cst_84 = arith.constant dense<0.000000e+00> : vector<4x8x32xf32>
      %133 = tpu.matmul %132, %22, %cst_84 {dimension_numbers = #tpu.dot_dimension_numbers<[2], [1], [1], [2], [0, 0, 0, 1, 1, 2], [0], [0]>} : vector<4x8x8xbf16>, vector<4x8x32xbf16>, vector<4x8x32xf32> -> vector<4x8x32xf32>
      "tpu.trace_stop"() : () -> ()
      %cst_85 = arith.constant dense<0.000000e+00> : vector<8x32xf32>
      %134 = vector.multi_reduction <add>, %133, %cst_85 [0] : vector<4x8x32xf32> to vector<8x32xf32>
      %135 = arith.addf %107, %134 : vector<8x32xf32>
      %cst_86 = arith.constant dense<0.000000e+00> : vector<8xf32>
      %136 = vector.multi_reduction <add>, %135, %cst_86 [1] : vector<8x32xf32> to vector<8xf32>
      %137 = vector.shape_cast %136 : vector<8xf32> to vector<8x1xf32>
      %cst_87 = arith.constant 3.200000e+01 : f32
      %138 = vector.broadcast %cst_87 : f32 to vector<8x1xf32>
      %139 = arith.divf %137, %138 : vector<8x1xf32>
      %140 = vector.broadcast %139 : vector<8x1xf32> to vector<8x32xf32>
      %141 = arith.subf %135, %140 : vector<8x32xf32>
      %142 = arith.mulf %141, %141 : vector<8x32xf32>
      %cst_88 = arith.constant dense<0.000000e+00> : vector<8xf32>
      %143 = vector.multi_reduction <add>, %142, %cst_88 [1] : vector<8x32xf32> to vector<8xf32>
      %144 = vector.shape_cast %143 : vector<8xf32> to vector<8x1xf32>
      %cst_89 = arith.constant 3.200000e+01 : f32
      %145 = vector.broadcast %cst_89 : f32 to vector<8x1xf32>
      %146 = arith.divf %144, %145 : vector<8x1xf32>
      %147 = vector.broadcast %139 : vector<8x1xf32> to vector<8x32xf32>
      %148 = arith.subf %135, %147 : vector<8x32xf32>
      %cst_90 = arith.constant 9.99999974E-6 : f32
      %149 = vector.broadcast %cst_90 : f32 to vector<8x1xf32>
      %150 = arith.addf %146, %149 : vector<8x1xf32>
      %151 = math.rsqrt %150 : vector<8x1xf32>
      %152 = vector.broadcast %151 : vector<8x1xf32> to vector<8x32xf32>
      %153 = arith.mulf %148, %152 : vector<8x32xf32>
      %154 = vector.broadcast %25 : vector<1x32xf32> to vector<8x32xf32>
      %155 = arith.mulf %153, %154 : vector<8x32xf32>
      %156 = vector.broadcast %26 : vector<1x32xf32> to vector<8x32xf32>
      %157 = arith.addf %155, %156 : vector<8x32xf32>
      %158 = arith.truncf %157 : vector<8x32xf32> to vector<8x32xbf16>
      %cst_91 = arith.constant dense<0.000000e+00> : vector<8x64xf32>
      %159 = tpu.matmul %158, %29, %cst_91 {dimension_numbers = #tpu.dot_dimension_numbers<[1], [0], [0], [1], [0, 0, 1, 1], [], []>} : vector<8x32xbf16>, vector<32x64xbf16>, vector<8x64xf32> -> vector<8x64xf32>
      %160 = vector.broadcast %30 : vector<1x64xf32> to vector<8x64xf32>
      %161 = arith.addf %159, %160 : vector<8x64xf32>
      %cst_92 = arith.constant 0.000000e+00 : f32
      %162 = vector.broadcast %cst_92 : f32 to vector<8x64xf32>
      %163 = arith.maximumf %161, %162 : vector<8x64xf32>
      %164 = arith.truncf %163 : vector<8x64xf32> to vector<8x64xbf16>
      %cst_93 = arith.constant dense<0.000000e+00> : vector<8x32xf32>
      %165 = tpu.matmul %164, %31, %cst_93 {dimension_numbers = #tpu.dot_dimension_numbers<[1], [0], [0], [1], [0, 0, 1, 1], [], []>} : vector<8x64xbf16>, vector<64x32xbf16>, vector<8x32xf32> -> vector<8x32xf32>
      %166 = vector.broadcast %32 : vector<1x32xf32> to vector<8x32xf32>
      %167 = arith.addf %165, %166 : vector<8x32xf32>
      %168 = arith.addf %157, %167 : vector<8x32xf32>
      %cst_94 = arith.constant dense<0.000000e+00> : vector<8xf32>
      %169 = vector.multi_reduction <add>, %168, %cst_94 [1] : vector<8x32xf32> to vector<8xf32>
      %170 = vector.shape_cast %169 : vector<8xf32> to vector<8x1xf32>
      %cst_95 = arith.constant 3.200000e+01 : f32
      %171 = vector.broadcast %cst_95 : f32 to vector<8x1xf32>
      %172 = arith.divf %170, %171 : vector<8x1xf32>
      %173 = vector.broadcast %172 : vector<8x1xf32> to vector<8x32xf32>
      %174 = arith.subf %168, %173 : vector<8x32xf32>
      %175 = arith.mulf %174, %174 : vector<8x32xf32>
      %cst_96 = arith.constant dense<0.000000e+00> : vector<8xf32>
      %176 = vector.multi_reduction <add>, %175, %cst_96 [1] : vector<8x32xf32> to vector<8xf32>
      %177 = vector.shape_cast %176 : vector<8xf32> to vector<8x1xf32>
      %cst_97 = arith.constant 3.200000e+01 : f32
      %178 = vector.broadcast %cst_97 : f32 to vector<8x1xf32>
      %179 = arith.divf %177, %178 : vector<8x1xf32>
      %180 = vector.broadcast %172 : vector<8x1xf32> to vector<8x32xf32>
      %181 = arith.subf %168, %180 : vector<8x32xf32>
      %cst_98 = arith.constant 9.99999974E-6 : f32
      %182 = vector.broadcast %cst_98 : f32 to vector<8x1xf32>
      %183 = arith.addf %179, %182 : vector<8x1xf32>
      %184 = math.rsqrt %183 : vector<8x1xf32>
      %185 = vector.broadcast %184 : vector<8x1xf32> to vector<8x32xf32>
      %186 = arith.mulf %181, %185 : vector<8x32xf32>
      %187 = vector.broadcast %27 : vector<1x32xf32> to vector<8x32xf32>
      %188 = arith.mulf %186, %187 : vector<8x32xf32>
      %189 = vector.broadcast %28 : vector<1x32xf32> to vector<8x32xf32>
      %190 = arith.addf %188, %189 : vector<8x32xf32>
      scf.yield %190 : vector<8x32xf32>
    }
    %c0_60 = arith.constant 0 : index
    %c0_61 = arith.constant 0 : index
    %c0_62 = arith.constant 0 : index
    %45 = vector.load %arg25[%c0_60, %c0_61, %c0_62] : memref<1x8x32xf32, #tpu.memory_space<vmem>>, vector<1x8x32xf32>
    %46 = vector.shape_cast %45 : vector<1x8x32xf32> to vector<8x32xf32>
    %47 = vector.shape_cast %44 : vector<8x32xf32> to vector<1x8x32xf32>
    tpu.vector_store %arg25[%c0_60, %c0_61, %c0_62], %47 {strides = array<i32>} : memref<1x8x32xf32, #tpu.memory_space<vmem>>, vector<1x8x32xf32>,
    return
  }
  func.func @transform_0(%arg0: i32) -> (i32, i32, i32) {
    %c0_i32 = arith.constant 0 : i32
    %c0_i32_0 = arith.constant 0 : i32
    %c0_i32_1 = arith.constant 0 : i32
    return %arg0, %c0_i32, %c0_i32_0 : i32, i32, i32
  }
  func.func @transform_1(%arg0: i32) -> (i32, i32, i32) {
    %c0_i32 = arith.constant 0 : i32
    %c0_i32_0 = arith.constant 0 : i32
    %c0_i32_1 = arith.constant 0 : i32
    return %arg0, %c0_i32, %c0_i32_0 : i32, i32, i32
  }
  func.func @transform_2(%arg0: i32) -> (i32, i32, i32) {
    %c0_i32 = arith.constant 0 : i32
    %c0_i32_0 = arith.constant 0 : i32
    %c0_i32_1 = arith.constant 0 : i32
    return %arg0, %c0_i32, %c0_i32_0 : i32, i32, i32
  }
  func.func @transform_3(%arg0: i32) -> (i32, i32, i32) {
    %c0_i32 = arith.constant 0 : i32
    %c0_i32_0 = arith.constant 0 : i32
    %c0_i32_1 = arith.constant 0 : i32
    return %arg0, %c0_i32, %c0_i32_0 : i32, i32, i32
  }
  func.func @transform_4(%arg0: i32) -> (i32, i32) {
    %c0_i32 = arith.constant 0 : i32
    %c0_i32_0 = arith.constant 0 : i32
    %c0_i32_1 = arith.constant 0 : i32
    return %c0_i32, %c0_i32_0 : i32, i32
  }
  func.func @transform_5(%arg0: i32) -> (i32, i32) {
    %c0_i32 = arith.constant 0 : i32
    %c0_i32_0 = arith.constant 0 : i32
    %c0_i32_1 = arith.constant 0 : i32
    return %c0_i32, %c0_i32_0 : i32, i32
  }
  func.func @transform_6(%arg0: i32) -> (i32, i32, i32) {
    %c0_i32 = arith.constant 0 : i32
    %c0_i32_0 = arith.constant 0 : i32
    %c0_i32_1 = arith.constant 0 : i32
    %c0_i32_2 = arith.constant 0 : i32
    return %c0_i32, %c0_i32_0, %c0_i32_1 : i32, i32, i32
  }
  func.func @transform_7(%arg0: i32) -> (i32, i32, i32) {
    %c0_i32 = arith.constant 0 : i32
    %c0_i32_0 = arith.constant 0 : i32
    %c0_i32_1 = arith.constant 0 : i32
    %c0_i32_2 = arith.constant 0 : i32
    return %c0_i32, %c0_i32_0, %c0_i32_1 : i32, i32, i32
  }
  func.func @transform_8(%arg0: i32) -> (i32, i32, i32) {
    %c0_i32 = arith.constant 0 : i32
    %c0_i32_0 = arith.constant 0 : i32
    %c0_i32_1 = arith.constant 0 : i32
    %c0_i32_2 = arith.constant 0 : i32
    return %c0_i32, %c0_i32_0, %c0_i32_1 : i32, i32, i32
  }
  func.func @transform_9(%arg0: i32) -> (i32, i32, i32) {
    %c0_i32 = arith.constant 0 : i32
    %c0_i32_0 = arith.constant 0 : i32
    %c0_i32_1 = arith.constant 0 : i32
    %c0_i32_2 = arith.constant 0 : i32
    return %c0_i32, %c0_i32_0, %c0_i32_1 : i32, i32, i32
  }
  func.func @transform_10(%arg0: i32) -> (i32, i32, i32) {
    %c0_i32 = arith.constant 0 : i32
    %c0_i32_0 = arith.constant 0 : i32
    %c0_i32_1 = arith.constant 0 : i32
    %c0_i32_2 = arith.constant 0 : i32
    return %c0_i32, %c0_i32_0, %c0_i32_1 : i32, i32, i32
  }
  func.func @transform_11(%arg0: i32) -> (i32, i32, i32) {
    %c0_i32 = arith.constant 0 : i32
    %c0_i32_0 = arith.constant 0 : i32
    %c0_i32_1 = arith.constant 0 : i32
    %c0_i32_2 = arith.constant 0 : i32
    return %c0_i32, %c0_i32_0, %c0_i32_1 : i32, i32, i32
  }
  func.func @transform_12(%arg0: i32) -> (i32, i32, i32) {
    %c0_i32 = arith.constant 0 : i32
    %c0_i32_0 = arith.constant 0 : i32
    %c0_i32_1 = arith.constant 0 : i32
    %c0_i32_2 = arith.constant 0 : i32
    return %c0_i32, %c0_i32_0, %c0_i32_1 : i32, i32, i32
  }
  func.func @transform_13(%arg0: i32) -> (i32, i32, i32) {
    %c0_i32 = arith.constant 0 : i32
    %c0_i32_0 = arith.constant 0 : i32
    %c0_i32_1 = arith.constant 0 : i32
    %c0_i32_2 = arith.constant 0 : i32
    return %c0_i32, %c0_i32_0, %c0_i32_1 : i32, i32, i32
  }
  func.func @transform_14(%arg0: i32) -> (i32, i32) {
    %c0_i32 = arith.constant 0 : i32
    %c0_i32_0 = arith.constant 0 : i32
    %c0_i32_1 = arith.constant 0 : i32
    return %c0_i32, %c0_i32_0 : i32, i32
  }
  func.func @transform_15(%arg0: i32) -> (i32, i32) {
    %c0_i32 = arith.constant 0 : i32
    %c0_i32_0 = arith.constant 0 : i32
    %c0_i32_1 = arith.constant 0 : i32
    return %c0_i32, %c0_i32_0 : i32, i32
  }
  func.func @transform_16(%arg0: i32) -> (i32, i32) {
    %c0_i32 = arith.constant 0 : i32
    %c0_i32_0 = arith.constant 0 : i32
    %c0_i32_1 = arith.constant 0 : i32
    return %c0_i32, %c0_i32_0 : i32, i32
  }
  func.func @transform_17(%arg0: i32) -> (i32, i32) {
    %c0_i32 = arith.constant 0 : i32
    %c0_i32_0 = arith.constant 0 : i32
    %c0_i32_1 = arith.constant 0 : i32
    return %c0_i32, %c0_i32_0 : i32, i32
  }
  func.func @transform_18(%arg0: i32) -> (i32, i32) {
    %c0_i32 = arith.constant 0 : i32
    %c0_i32_0 = arith.constant 0 : i32
    %c0_i32_1 = arith.constant 0 : i32
    return %c0_i32, %c0_i32_0 : i32, i32
  }
  func.func @transform_19(%arg0: i32) -> (i32, i32) {
    %c0_i32 = arith.constant 0 : i32
    %c0_i32_0 = arith.constant 0 : i32
    %c0_i32_1 = arith.constant 0 : i32
    return %c0_i32, %c0_i32_0 : i32, i32
  }
  func.func @transform_20(%arg0: i32) -> (i32, i32) {
    %c0_i32 = arith.constant 0 : i32
    %c0_i32_0 = arith.constant 0 : i32
    %c0_i32_1 = arith.constant 0 : i32
    return %c0_i32, %c0_i32_0 : i32, i32
  }
  func.func @transform_21(%arg0: i32) -> (i32, i32) {
    %c0_i32 = arith.constant 0 : i32
    %c0_i32_0 = arith.constant 0 : i32
    %c0_i32_1 = arith.constant 0 : i32
    return %c0_i32, %c0_i32_0 : i32, i32
  }
  func.func @transform_22(%arg0: i32) -> (i32, i32) {
    %c0_i32 = arith.constant 0 : i32
    %c0_i32_0 = arith.constant 0 : i32
    %c0_i32_1 = arith.constant 0 : i32
    return %c0_i32, %c0_i32_0 : i32, i32
  }
  func.func @transform_23(%arg0: i32) -> (i32, i32) {
    %c0_i32 = arith.constant 0 : i32
    %c0_i32_0 = arith.constant 0 : i32
    %c0_i32_1 = arith.constant 0 : i32
    return %c0_i32, %c0_i32_0 : i32, i32
  }
  func.func @transform_24(%arg0: i32) -> (i32, i32, i32) {
    %c0_i32 = arith.constant 0 : i32
    %c0_i32_0 = arith.constant 0 : i32
    %c0_i32_1 = arith.constant 0 : i32
    return %arg0, %c0_i32, %c0_i32_0 : i32, i32, i32
  }
}

</mosaic_0001>

<bundles_post_ra>
// kernel: decoder_forward.1
= control target key start
LH: loop header
LB: loop body
LE: loop exit
PB: predicated region body
PF: predicated region fallthrough
CT: control target
= control target key end

     0   :  { %s4126_s0 = inlined_call_operand.vmem [shape: f32[2,8,32], index: 0, kind: input, shape index: {}]   ;;  %s4127_s1 = inlined_call_operand.vmem [shape: f32[2,10,32], index: 1, kind: input, shape index: {}]   ;;  %s4128_s2 = inlined_call_operand.vmem [shape: f32[2,1,8], index: 2, kind: input, shape index: {}]   ;;  %s4129_s3 = inlined_call_operand.vmem [shape: f32[2,1,10], index: 3, kind: input, shape index: {}]   ;;  %s4130_s4 = inlined_call_operand.vmem [shape: f32[8,8], index: 4, kind: input, shape index: {}]   ;;  %s4131_s5 = inlined_call_operand.vmem [shape: f32[8,10], index: 5, kind: input, shape index: {}]   ;;  %s4132_s6 = inlined_call_operand.vmem [shape: bf16[4,32,8], index: 6, kind: input, shape index: {}]   ;;  %s4133_s7 = inlined_call_operand.vmem [shape: bf16[4,32,8], index: 7, kind: input, shape index: {}]   ;;  %s4134_s8 = inlined_call_operand.vmem [shape: bf16[4,32,8], index: 8, kind: input, shape index: {}]   ;;  %s4135_s9 = inlined_call_operand.vmem [shape: bf16[4,8,32], index: 9, kind: input, shape index: {}]   ;;  %s4136_s10 = inlined_call_operand.vmem [shape: bf16[4,32,8], index: 10, kind: input, shape index: {}]   ;;  %s4137_s11 = inlined_call_operand.vmem [shape: bf16[4,32,8], index: 11, kind: input, shape index: {}]   ;;  %s4138_s12 = inlined_call_operand.vmem [shape: bf16[4,32,8], index: 12, kind: input, shape index: {}]   ;;  %s4139_s13 = inlined_call_operand.vmem [shape: bf16[4,8,32], index: 13, kind: input, shape index: {}]   ;;  %s4140_s14 = inlined_call_operand.vmem [shape: f32[1,32], index: 14, kind: input, shape index: {}]   ;;  %s4141_s15 = inlined_call_operand.vmem [shape: f32[1,32], index: 15, kind: input, shape index: {}]   ;;  %s4142_s16 = inlined_call_operand.vmem [shape: f32[1,32], index: 16, kind: input, shape index: {}]   ;;  %s4143_s17 = inlined_call_operand.vmem [shape: f32[1,32], index: 17, kind: input, shape index: {}]   ;;  %s4144_s18 = inlined_call_operand.vmem [shape: f32[1,32], index: 18, kind: input, shape index: {}]   ;;  %s4145_s19 = inlined_call_operand.vmem [shape: f32[1,32], index: 19, kind: input, shape index: {}]   ;;  %s4146_s20 = inlined_call_operand.vmem [shape: bf16[32,64], index: 20, kind: input, shape index: {}]   ;;  %s4147_s21 = inlined_call_operand.vmem [shape: f32[1,64], index: 21, kind: input, shape index: {}]   ;;  %s4148_s22 = inlined_call_operand.vmem [shape: bf16[64,32], index: 22, kind: input, shape index: {}]   ;;  %s4149_s23 = inlined_call_operand.vmem [shape: f32[1,32], index: 23, kind: input, shape index: {}]   ;;  %s4150_s24 = inlined_call_operand.hbm [shape: f32[2,8,32], index: 24, kind: output, shape index: {}]  }
   0x1   :  { %4180 = sst [smem:[#allocation82_spill]] %s4126_s0 }
   0x2   :  { %4181 = sst [smem:[#allocation83_spill]] %s4127_s1 }
   0x3   :  { %4182 = sst [smem:[#allocation84_spill]] %s4128_s2 }
   0x4   :  { %4183 = sst [smem:[#allocation85_spill]] %s4129_s3 }
   0x5   :  { %4184 = sst [smem:[#allocation86_spill]] %s4130_s4 }
   0x6   :  { %4185 = sst [smem:[#allocation87_spill]] %s4131_s5 }
   0x7   :  { %4186 = sst [smem:[#allocation88_spill]] %s4132_s6 }
   0x8   :  { %4187 = sst [smem:[#allocation89_spill]] %s4133_s7 }
   0x9   :  { %4188 = sst [smem:[#allocation90_spill]] %s4134_s8 }
   0xa   :  { %4189 = sst [smem:[#allocation91_spill]] %s4135_s9 }
   0xb   :  { %4190 = sst [smem:[#allocation92_spill]] %s4136_s10 }
   0xc   :  { %4191 = sst [smem:[#allocation93_spill]] %s4137_s11 }
   0xd   :  { %4192 = sst [smem:[#allocation94_spill]] %s4139_s13 }
   0xe   :  { %4193 = sst [smem:[#allocation95_spill]] %s4140_s14 }
   0xf   :  { %4194 = sst [smem:[#allocation96_spill]] %s4141_s15 }
  0x10   :  { %4195 = sst [smem:[#allocation97_spill]] %s4142_s16 }
  0x11   :  { %4196 = sst [smem:[#allocation98_spill]] %s4150_s24 }
  0x12   :  { %29 = vsyncpa [#allocation3], 0 }
  0x13   :  { %31 = vsyncpa [#allocation3 + $0x1], 0  ;;  %s3150_s5 = smov 0   ;;  %s3152_s26 = smov 0  }
  0x14   :  { %s3154_s27 = smov 0   ;;  %s3156_s28 = smov 0  }
  0x15 LB: > { %4197 = sst [smem:[#allocation5_spill]] %s3002_s5  ;;  %s3171_s6 = sadd.s32 4294967295, %s3014_s28   ;;  %s3014_s28 = sphi %s3156_s28, %s4387_s28   ;;  %s3010_s27 = sphi %s3154_s27, %s4392_s27   ;;  %s3006_s26 = sphi %s3152_s26, %s4391_s26   ;;  %s3002_s5 = sphi %s3150_s5, %s4390_s5  }
  0x16   : > { %4198 = sst [smem:[#allocation6_spill]] %s3010_s27  ;;  %s2513_s2 = sadd.s32 4294967294, %s3014_s28  }
  0x17   : > { %4199 = sst [smem:[#allocation7_spill]] %s3014_s28  ;;  %s3175_s29 = sadd.s32 1, %s3014_s28  }
  0x18   : > { %4200 = sst [smem:[#allocation8_spill]] %s3175_s29  ;;  %s568_s0 = sadd.s32 1, %s3010_s27 }
  0x19   : > { %s565_s7 = ssub.s32 %s3014_s28, %s3175_s29  ;;  %p578_p0 = scmp.ne.s32.totalorder %s3010_s27, %s3006_s26 }
  0x1a   : > { %p566_p1 = scmp.eq.s32.totalorder %s565_s7, 0  ;;  %p579_p2 = scmp.eq.s32.totalorder %s3171_s6, 1 }
  0x1b   : > { %p584_p3 = scmp.ne.s32.totalorder %s3006_s26, %s3002_s5  ;;  %p585_p4 = scmp.eq.s32.totalorder %s2513_s2, 1 }
  0x1c   : > { %s3186_s30 = scalar_select %p566_p1, %s3010_s27, %s568_s0  }
  0x1d   : > { %p3188_p5 = por %p579_p2, %p578_p0  ;;  %p3192_p6 = por %p585_p4, %p584_p3 }
  0x1e   : > { %4201 = sst [smem:[#allocation9_spill]] %s3186_s30  ;;  %p2516_p7 = scmp.ge.s32.totalorder %s3014_s28, 1 }
  0x1f   : > { %s4202_s3 = scalar_select %p3188_p5, 1, 0 }
  0x20   : > { %s4204_s25 = scalar_select %p3192_p6, 1, 0 }
  0x21   : > { %4203 = sst [smem:[#allocation10_spill]] %s4202_s3  ;;  %p690_p8 = scmp.lt.s32.totalorder %s3014_s28, 3 }
  0x22   : > { %4205 = sst [smem:[#allocation11_spill]] %s4204_s25 }
  0x23   : > { %p691_p9 = pnand %p2516_p7, %p690_p8 }
  0x25   : > { %694 = sbr.rel (%p691_p9) target bundleno = 2752 (0xac0), region = 116 }
  0x2a   : > { %s4160_s8 = sand.u32 1, %s3006_s26   ;;  %s4206_s2 = sld [smem:[#allocation88_spill]]  ;;  %vm940_vm0 = vcmask 261120  }
  0x2b   : > { %s4209_s11 = sld [smem:[#allocation93_spill]]  ;;  %s3214_s29 = sshll.u32 %s4160_s8, 3 }
  0x2c   : > { %s4224_s0 = sld [smem:[#allocation89_spill]]  ;;  %p766_p10 = scmp.lt.s32.totalorder %s3171_s6, 1 }
  0x2d   : > { %s4225_s28 = sld [smem:[#allocation90_spill]] }
  0x2e   : > { %s4231_s9 = sld [smem:[#allocation91_spill]] }
  0x2f   : > { %s4236_s10 = sld [smem:[#allocation92_spill]] }
  0x30   : > { %v3202_v0 = vld [vmem:[%s4206_s2] sm:$0xf]  ;;  %v3207_v1 = vld [vmem:[%s4206_s2] sm:$0xf0]  ;;  %v3219_v3 = vld [vmem:[%s4206_s2 + $0x8] sm:$0xf] }
  0x31   : > { %4207 = vst [vmem:[#allocation12_spill] sm:$0xff] %v3202_v0  ;;  %v2825_v2 = vld [vmem:[%s4209_s11 + $0x8] sm:$0xff]  ;;  %v2827_v5 = vld [vmem:[%s4209_s11 + $0x18] sm:$0xff]  ;;  %v3232_v6 = vld [vmem:[%s4206_s2 + $0x10] sm:$0xf]  ;;  %s4253_s13 = sld [smem:[#allocation94_spill]] }
  0x32   : > { %4208 = vst [vmem:[#allocation13_spill] sm:$0xff] %v3207_v1  ;;  %v3224_v4 = vld [vmem:[%s4206_s2 + $0x8] sm:$0xf0]  ;;  %v3237_v7 = vld [vmem:[%s4206_s2 + $0x10] sm:$0xf0]  ;;  %950 = vmatpush.bf16.msra.mxu0 %v2825_v2  ;;  %976 = vmatpush.bf16.msra.mxu1 %v2827_v5  ;;  %s4258_s14 = sld [smem:[#allocation95_spill]] }
  0x33   : > { %4210 = vst [vmem:[#allocation14_spill] sm:$0xff] %v3219_v3  ;;  %v2829_v8 = vld [vmem:[%s4209_s11 + $0x28] sm:$0xff]  ;;  %v3245_v9 = vld [vmem:[%s4206_s2 + $0x18] sm:$0xf]  ;;  %v3250_v10 = vld [vmem:[%s4206_s2 + $0x18] sm:$0xf0] }
  0x34   : > { %4211 = vst [vmem:[#allocation15_spill] sm:$0xff] %v3224_v4  ;;  %v3255_v11 = vld [vmem:[%s4206_s2 + $0x20] sm:$0xf]  ;;  %v3260_v12 = vld [vmem:[%s4206_s2 + $0x20] sm:$0xf0]  ;;  %1002 = vmatpush.bf16.msra.mxu2 %v2829_v8  ;;  %s4260_s15 = sld [smem:[#allocation96_spill]] }
  0x35   : > { %4212 = vst [vmem:[#allocation16_spill] sm:$0xff] %v3232_v6  ;;  %v3265_v13 = vld [vmem:[%s4206_s2 + $0x28] sm:$0xf]  ;;  %v3270_v14 = vld [vmem:[%s4206_s2 + $0x28] sm:$0xf0]  ;;  %s4262_s16 = sld [smem:[#allocation97_spill]] }
  0x36   : > { %4213 = vst [vmem:[#allocation17_spill] sm:$0xff] %v3237_v7  ;;  %v3275_v15 = vld [vmem:[%s4206_s2 + $0x30] sm:$0xf]  ;;  %v3280_v16 = vld [vmem:[%s4206_s2 + $0x30] sm:$0xf0]  ;;  %s3689_s1 = scalar_select %p766_p10, %s3171_s6, 1 }
  0x37   : > { %4214 = vst [vmem:[#allocation18_spill] sm:$0xff] %v3245_v9  ;;  %v3285_v17 = vld [vmem:[%s4206_s2 + $0x38] sm:$0xf]  ;;  %v3290_v18 = vld [vmem:[%s4206_s2 + $0x38] sm:$0xf0]  ;;  %s4226_s2 = smov %s4225_s28  ;;  %s4282_s8 = sld [smem:[#allocation82_spill]] }
  0x38   : > { %4215 = vst [vmem:[#allocation19_spill] sm:$0xff] %v3250_v10  ;;  %v3295_v19 = vld [vmem:[%s4224_s0] sm:$0xf]  ;;  %v3300_v20 = vld [vmem:[%s4224_s0] sm:$0xf0]  ;;  %s2518_s30 = sshll.u32 %s3689_s1, 3 }
  0x39   : > { %4216 = vst [vmem:[#allocation20_spill] sm:$0xff] %v3255_v11  ;;  %v3305_v21 = vld [vmem:[%s4224_s0 + $0x8] sm:$0xf]  ;;  %v3310_v22 = vld [vmem:[%s4224_s0 + $0x8] sm:$0xf0]  ;;  %s2791_s5 = sshll.u32 %s3689_s1, 4 }
  0x3a   : > { %4217 = vst [vmem:[#allocation21_spill] sm:$0xff] %v3260_v12  ;;  %v3315_v23 = vld [vmem:[%s4224_s0 + $0x10] sm:$0xf]  ;;  %v3320_v24 = vld [vmem:[%s4224_s0 + $0x10] sm:$0xf0]  ;;  %s4284_s25 = sld [smem:[#allocation87_spill]] }
  0x3b   : > { %4218 = vst [vmem:[#allocation22_spill] sm:$0xff] %v3265_v13  ;;  %v3325_v25 = vld [vmem:[%s4224_s0 + $0x18] sm:$0xf]  ;;  %v3330_v26 = vld [vmem:[%s4224_s0 + $0x18] sm:$0xf0]  ;;  %s4286_s3 = sld [smem:[#allocation85_spill]] }
  0x3c   : > { %4219 = vst [vmem:[#allocation23_spill] sm:$0xff] %v3270_v14  ;;  %v3335_v27 = vld [vmem:[%s4224_s0 + $0x20] sm:$0xf]  ;;  %v3340_v28 = vld [vmem:[%s4224_s0 + $0x20] sm:$0xf0] }
  0x3d   : > { %4220 = vst [vmem:[#allocation24_spill] sm:$0xff] %v3275_v15  ;;  %v3345_v29 = vld [vmem:[%s4224_s0 + $0x28] sm:$0xf]  ;;  %v3350_v30 = vld [vmem:[%s4224_s0 + $0x28] sm:$0xf0] }
  0x3e   : > { %4221 = vst [vmem:[#allocation25_spill] sm:$0xff] %v3280_v16  ;;  %v3355_v31 = vld [vmem:[%s4224_s0 + $0x30] sm:$0xf]  ;;  %v3360_v32 = vld [vmem:[%s4224_s0 + $0x30] sm:$0xf0] }
  0x3f   : > { %4222 = vst [vmem:[#allocation26_spill] sm:$0xff] %v3285_v17  ;;  %v3365_v33 = vld [vmem:[%s4224_s0 + $0x38] sm:$0xf]  ;;  %v3370_v34 = vld [vmem:[%s4224_s0 + $0x38] sm:$0xf0]  ;;  %s4281_s0 = sld [smem:[#allocation86_spill]] }
  0x40   : > { %4223 = vst [vmem:[#allocation27_spill] sm:$0xff] %v3290_v18  ;;  %v3375_v35 = vld [vmem:[%s4225_s28] sm:$0xf]  ;;  %v3380_v36 = vld [vmem:[%s4226_s2] sm:$0xf0] }
  0x41   : > { %v3385_v37 = vld [vmem:[%s4226_s2 + $0x8] sm:$0xf]  ;;  %v3390_v38 = vld [vmem:[%s4226_s2 + $0x8] sm:$0xf0]  ;;  %v3395_v39 = vld [vmem:[%s4226_s2 + $0x10] sm:$0xf]  ;;  %s780_s28 = scalar_lea.vmem %s4286_s3, %s3689_s1 }
  0x42   : > { %v3400_v40 = vld [vmem:[%s4226_s2 + $0x10] sm:$0xf0]  ;;  %v3405_v41 = vld [vmem:[%s4226_s2 + $0x18] sm:$0xf]  ;;  %v3410_v42 = vld [vmem:[%s4226_s2 + $0x18] sm:$0xf0] }
  0x43   : > { %v3415_v43 = vld [vmem:[%s4226_s2 + $0x20] sm:$0xf]  ;;  %v3420_v44 = vld [vmem:[%s4226_s2 + $0x20] sm:$0xf0]  ;;  %v3425_v45 = vld [vmem:[%s4226_s2 + $0x28] sm:$0xf] }
  0x44   : > { %v3430_v46 = vld [vmem:[%s4226_s2 + $0x28] sm:$0xf0]  ;;  %v3435_v47 = vld [vmem:[%s4226_s2 + $0x30] sm:$0xf]  ;;  %v3440_v48 = vld [vmem:[%s4226_s2 + $0x30] sm:$0xf0] }
  0x45   : > { %4227 = vst [vmem:[#allocation28_spill] sm:$0xff] %v3435_v47  ;;  %v3445_v49 = vld [vmem:[%s4226_s2 + $0x38] sm:$0xf]  ;;  %v3450_v50 = vld [vmem:[%s4226_s2 + $0x38] sm:$0xf0] }
  0x46   : > { %4228 = vst [vmem:[#allocation29_spill] sm:$0xff] %v3440_v48  ;;  %v3455_v51 = vld [vmem:[%s4231_s9] sm:$0xf]  ;;  %v3460_v52 = vld [vmem:[%s4231_s9 + $0x4] sm:$0xf] }
  0x47   : > { %4229 = vst [vmem:[#allocation30_spill] sm:$0xff] %v3445_v49  ;;  %v3465_v53 = vld [vmem:[%s4231_s9 + $0x8] sm:$0xf]  ;;  %v3470_v54 = vld [vmem:[%s4231_s9 + $0xc] sm:$0xf]  ;;  %s769_s9 = scalar_lea.vmem %s4282_s8, %s2518_s30 }
  0x48   : > { %4230 = vst [vmem:[#allocation31_spill] sm:$0xff] %v3450_v50  ;;  %v3475_v55 = vld [vmem:[%s4236_s10] sm:$0xf]  ;;  %v3480_v56 = vld [vmem:[%s4236_s10] sm:$0xf0] }
  0x49   : > { %4232 = vst [vmem:[#allocation32_spill] sm:$0xff] %v3455_v51  ;;  %v3485_v57 = vld [vmem:[%s4236_s10 + $0x8] sm:$0xf]  ;;  %v3490_v58 = vld [vmem:[%s4236_s10 + $0x8] sm:$0xf0] }
  0x4a   : > { %4233 = vst [vmem:[#allocation33_spill] sm:$0xff] %v3460_v52  ;;  %v3495_v59 = vld [vmem:[%s4236_s10 + $0x10] sm:$0xf]  ;;  %v3500_v60 = vld [vmem:[%s4236_s10 + $0x10] sm:$0xf0] }
  0x4b   : > { %4234 = vst [vmem:[#allocation34_spill] sm:$0xff] %v3465_v53  ;;  %v3505_v61 = vld [vmem:[%s4236_s10 + $0x18] sm:$0xf]  ;;  %v3510_v62 = vld [vmem:[%s4236_s10 + $0x18] sm:$0xf0] }
  0x4c   : > { %4235 = vst [vmem:[#allocation35_spill] sm:$0xff] %v3470_v54  ;;  %v3515_v63 = vld [vmem:[%s4236_s10 + $0x20] sm:$0xf]  ;;  %v3520_v2 = vld [vmem:[%s4236_s10 + $0x20] sm:$0xf0] }
  0x4d   : > { %4237 = vst [vmem:[#allocation36_spill] sm:$0xff] %v3475_v55  ;;  %v3525_v5 = vld [vmem:[%s4236_s10 + $0x28] sm:$0xf]  ;;  %v3530_v8 = vld [vmem:[%s4236_s10 + $0x28] sm:$0xf0] }
  0x4e   : > { %4238 = vst [vmem:[#allocation37_spill] sm:$0xff] %v3480_v56  ;;  %v3555_v56 = vld [vmem:[%s4253_s13] sm:$0xf]  ;;  %v3570_v55 = vld [vmem:[%s4253_s13 + $0xc] sm:$0xf] }
  0x4f   : > { %4239 = vst [vmem:[#allocation38_spill] sm:$0xff] %v3485_v57  ;;  %v2903_v51 = vld [vmem:[%s780_s28] ss:$0 sm:$0xff] }
  0x50   : > { %4240 = vst [vmem:[#allocation39_spill] sm:$0xff] %v3490_v58  ;;  %v2834_v58 = vld [vmem:[%s4138_s12 + $0x10] sm:$0xff] }
  0x51   : > { %4241 = vst [vmem:[#allocation40_spill] sm:$0xff] %v3495_v59  ;;  %v3550_v59 = vld [vmem:[%s4236_s10 + $0x38] sm:$0xf0] }
  0x52   : > { %4242 = vst [vmem:[#allocation41_spill] sm:$0xff] %v3500_v60  ;;  %v3535_v60 = vld [vmem:[%s4236_s10 + $0x30] sm:$0xf] }
  0x53   : > { %4243 = vst [vmem:[#allocation42_spill] sm:$0xff] %v3505_v61  ;;  %v2832_v61 = vld [vmem:[%s4138_s12] sm:$0xff] }
  0x54   : > { %4244 = vst [vmem:[#allocation43_spill] sm:$0xff] %v3510_v62  ;;  %v2838_v62 = vld [vmem:[%s4138_s12 + $0x30] sm:$0xff] }
  0x55   : > { %4245 = vst [vmem:[#allocation44_spill] sm:$0xff] %v3515_v63  ;;  %v3540_v63 = vld [vmem:[%s4236_s10 + $0x30] sm:$0xf0] }
  0x56   : > { %4246 = vst [vmem:[#allocation45_spill] sm:$0xff] %v3520_v2  ;;  %v3545_v2 = vld [vmem:[%s4236_s10 + $0x38] sm:$0xf] }
  0x57   : > { %4247 = vst [vmem:[#allocation46_spill] sm:$0xff] %v3525_v5  ;;  %v2836_v5 = vld [vmem:[%s4138_s12 + $0x20] sm:$0xff] }
  0x58   : > { %4248 = vst [vmem:[#allocation47_spill] sm:$0xff] %v3530_v8  ;;  %v2839_v8 = vld [vmem:[%s4138_s12 + $0x38] sm:$0xff] }
  0x59   : > { %4249 = vst [vmem:[#allocation48_spill] sm:$0xff] %v3535_v60  ;;  %v3560_v60 = vld [vmem:[%s4253_s13 + $0x4] sm:$0xf] }
  0x5a   : > { %4250 = vst [vmem:[#allocation49_spill] sm:$0xff] %v3540_v63  ;;  %v3565_v63 = vld [vmem:[%s4253_s13 + $0x8] sm:$0xf]  ;;  %s4283_s13 = sld [smem:[#allocation83_spill]] }
  0x5b   : > { %4251 = vst [vmem:[#allocation50_spill] sm:$0xff] %v3545_v2  ;;  %v2837_v2 = vld [vmem:[%s4138_s12 + $0x28] sm:$0xff] }
  0x5c   : > { %4252 = vst [vmem:[#allocation51_spill] sm:$0xff] %v3550_v59  ;;  %v3575_v59 = vld [vmem:[%s4258_s14] sm:$0x1] }
  0x5d   : > { %4254 = vst [vmem:[#allocation52_spill] sm:$0xff] %v3555_v56  ;;  %v3580_v56 = vld [vmem:[%s4260_s15] sm:$0x1] }
  0x5e   : > { %4255 = vst [vmem:[#allocation53_spill] sm:$0xff] %v3560_v60  ;;  %v3585_v60 = vld [vmem:[%s4262_s16] sm:$0x1] }
  0x5f   : > { %4256 = vst [vmem:[#allocation54_spill] sm:$0xff] %v3565_v63  ;;  %v3590_v63 = vld [vmem:[%s4143_s17] sm:$0x1] }
  0x60   : > { %4257 = vst [vmem:[#allocation55_spill] sm:$0xff] %v3570_v55  ;;  %v3595_v55 = vld [vmem:[%s4144_s18] sm:$0x1]  ;;  %s774_s14 = scalar_lea.vmem %s4283_s13, %s2791_s5  ;;  %s4285_s13 = sld [smem:[#allocation84_spill]] }
  0x61   : > { %4259 = vst [vmem:[#allocation56_spill] sm:$0xff] %v3575_v59  ;;  %v3600_v59 = vld [vmem:[%s4145_s19] sm:$0x1]  ;;  %v784_v57 = vld [vmem:[%s774_s14 + $0x8] sm:$0x3] }
  0x62   : > { %4261 = vst [vmem:[#allocation57_spill] sm:$0xff] %v3580_v56  ;;  %v3625_v56 = vld [vmem:[%s4147_s21] sm:$0x1]  ;;  %v786_v53 = vpack.c.bf16 %v784_v57, %v784_v57 }
  0x63   : > { %4263 = vst [vmem:[#allocation58_spill] sm:$0xff] %v3585_v60  ;;  %v3605_v60 = vld [vmem:[%s4146_s20] sm:$0xf] }
  0x64   : > { %4264 = vst [vmem:[#allocation59_spill] sm:$0xff] %v3590_v63  ;;  %v3610_v63 = vld [vmem:[%s4146_s20] sm:$0xf0]  ;;  %v926_v47 = vunpack.c.l.b16 %v786_v53 }
  0x65   : > { %4265 = vst [vmem:[#allocation60_spill] sm:$0xff] %v3595_v55  ;;  %v3615_v55 = vld [vmem:[%s4146_s20 + $0x8] sm:$0xf] }
  0x66   : > { %4266 = vst [vmem:[#allocation61_spill] sm:$0xff] %v3600_v59  ;;  %v3620_v59 = vld [vmem:[%s4146_s20 + $0x8] sm:$0xf0]  ;;  %s777_s15 = scalar_lea.vmem %s4285_s13, %s3689_s1 }
  0x67   : > { %4267 = vst [vmem:[#allocation62_spill] sm:$0xff] %v3605_v60  ;;  %v3630_v60 = vld [vmem:[%s4148_s22] sm:$0xf] }
  0x68   : > { %4268 = vst [vmem:[#allocation63_spill] sm:$0xff] %v3610_v63  ;;  %v3635_v63 = vld [vmem:[%s4148_s22] sm:$0xf0]  ;;  %v2902_v52 = vld [vmem:[%s777_s15] ss:$0 sm:$0xff] }
  0x69   : > { %4269 = vst [vmem:[#allocation64_spill] sm:$0xff] %v3615_v55  ;;  %v3655_v55 = vld [vmem:[%s4148_s22 + $0x10] sm:$0xf0] }
  0x6a   : > { %4270 = vst [vmem:[#allocation65_spill] sm:$0xff] %v3620_v59  ;;  %v3640_v59 = vld [vmem:[%s4148_s22 + $0x8] sm:$0xf] }
  0x6b   : > { %4271 = vst [vmem:[#allocation66_spill] sm:$0xff] %v3625_v56  ;;  %v3645_v56 = vld [vmem:[%s4148_s22 + $0x8] sm:$0xf0] }
  0x6c   : > { %4272 = vst [vmem:[#allocation67_spill] sm:$0xff] %v3630_v60  ;;  %v3650_v60 = vld [vmem:[%s4148_s22 + $0x10] sm:$0xf] }
  0x6d   : > { %4273 = vst [vmem:[#allocation68_spill] sm:$0xff] %v3635_v63  ;;  %v3660_v63 = vld [vmem:[%s4148_s22 + $0x18] sm:$0xf] }
  0x6e   : > { %4274 = vst [vmem:[#allocation69_spill] sm:$0xff] %v3640_v59  ;;  %v3665_v59 = vld [vmem:[%s4148_s22 + $0x18] sm:$0xf0] }
  0x6f   : > { %4275 = vst [vmem:[#allocation70_spill] sm:$0xff] %v3645_v56  ;;  %v3670_v56 = vld [vmem:[%s4149_s23] sm:$0x1] }
  0x70   : > { %4276 = vst [vmem:[#allocation71_spill] sm:$0xff] %v3650_v60  ;;  %v2831_v60 = vld [vmem:[%s4209_s11 + $0x38] sm:$0xff] }
  0x71   : > { %4277 = vst [vmem:[#allocation72_spill] sm:$0xff] %v3655_v55  ;;  %v2824_v55 = vld [vmem:[%s4209_s11] sm:$0xff]  ;;  %1028 = vmatpush.bf16.msra.mxu3 %v2831_v60  ;;  %v2833_v60 = vld [vmem:[%s4138_s12 + $0x8] sm:$0xff] }
  0x72   : > { %4278 = vst [vmem:[#allocation73_spill] sm:$0xff] %v3660_v63  ;;  %v2826_v63 = vld [vmem:[%s4209_s11 + $0x10] sm:$0xff]  ;;  %951 = vmatpush.bf16.msra.mxu0 %v2824_v55  ;;  %v787_v55 = vld [vmem:[%s4281_s0] sm:$0xff] }
  0x73   : > { %4279 = vst [vmem:[#allocation74_spill] sm:$0xff] %v3665_v59  ;;  %v2828_v59 = vld [vmem:[%s4209_s11 + $0x20] sm:$0xff]  ;;  %977 = vmatpush.bf16.msra.mxu1 %v2826_v63  ;;  %v2835_v63 = vld [vmem:[%s4138_s12 + $0x18] sm:$0xff]  ;;  %v3737_v48 = vadd.f32 %v2902_v52, %v787_v55 }
  0x74   : > { %4280 = vst [vmem:[#allocation75_spill] sm:$0xff] %v3670_v56  ;;  %v2830_v56 = vld [vmem:[%s4209_s11 + $0x30] sm:$0xff]  ;;  %1003 = vmatpush.bf16.msra.mxu2 %v2828_v59  ;;  %v793_v59 = vld [vmem:[%s4284_s25] sm:$0xff] }
  0x75   : > { %1029 = vmatpush.bf16.msra.mxu3 %v2830_v56  ;;  %v3739_v50 = vadd.f32 %v2903_v51, %v793_v59 }
  0x76   : > { %1062 = vmatpush.bf16.msrb.mxu0 %v2833_v60  ;;  %v783_v60 = vld [vmem:[%s774_s14] sm:$0xff]  ;;  %s3816_s14 = smov 0  }
  0x77   : > { %1088 = vmatpush.bf16.msrb.mxu1 %v2835_v63  ;;  %v785_v54 = vpack.c.bf16 %v783_v60, %v783_v60  ;;  %4287 = vst [vmem:[#allocation76_spill] sm:$0xff] %v3739_v50 }
  0x78   : > { %1114 = vmatpush.bf16.msrb.mxu2 %v2837_v2  ;;  %v782_v2 = vld [vmem:[%s769_s9] sm:$0xff]   ;;  %s765_s9 = scalar_lea.vmem [#allocation2], %s3214_s29 }
  0x79   : > { %1140 = vmatpush.bf16.msrb.mxu3 %v2839_v8  ;;  %v925_v56 = vunpack.c.l.b16 %v785_v54 }
  0x7a   : > { %1063 = vmatpush.bf16.msrb.mxu0 %v2832_v61 }
  0x7b   : > { %1089 = vmatpush.bf16.msrb.mxu1 %v2834_v58  ;;  %v927_v49 = vpack.c.b16 %v926_v47, %v925_v56 }
  0x7c   : > { %1115 = vmatpush.bf16.msrb.mxu2 %v2836_v5 }
  0x7d   : > { %1141 = vmatpush.bf16.msrb.mxu3 %v2838_v62  ;;  %2529 = vmatmul.msk.bf16.vlgmr.msra.gmra.mxu0 %vm940_vm0, %v927_v49 }
  0x7e   : > { %2538 = vmatmul.msk.bf16.vlgmr.msra.gmra.mxu1 %vm940_vm0, %v927_v49  ;;  %2547 = vmatmul.msk.bf16.vlgmr.msra.gmra.mxu2 %vm940_vm0, %v927_v49 }
  0x7f   : > { %2556 = vmatmul.msk.bf16.vlgmr.msra.gmra.mxu3 %vm940_vm0, %v927_v49 }
  0x8d   : > { %2565 = vmatmul.msk.bf16.vlgmr.msrb.gmra.mxu0 %vm940_vm0, %v927_v49 }
  0x8e   : > { %2574 = vmatmul.msk.bf16.vlgmr.msrb.gmra.mxu1 %vm940_vm0, %v927_v49  ;;  %2583 = vmatmul.msk.bf16.vlgmr.msrb.gmra.mxu2 %vm940_vm0, %v927_v49 }
  0x8f   : > { %2592 = vmatmul.msk.bf16.vlgmr.msrb.gmra.mxu3 %vm940_vm0, %v927_v49 }
  0xfa   : > { %v3749_v51 = vpop.f32.mrf.mxu0 }
  0xfb   : > { %v3751_v47 = vpop.f32.mrf.mxu1 }
 0x101   : > { %v3757_v54 = vpop.f32.mrf.mxu2 }
 0x102   : > { %v3759_v57 = vpop.f32.mrf.mxu3  ;;  %v3765_v61 = vpop.f32.mrf.mxu0 }
 0x103   : > { %v3767_v62 = vpop.f32.mrf.mxu1 }
 0x109   : > { %v3773_v55 = vpop.f32.mrf.mxu2 }
 0x10a   : > { %v3775_v63 = vpop.f32.mrf.mxu3  ;;  %v3781_v56 = vpop.f32.mrf.mxu0 }
 0x10b   : > { %4288 = vst [vmem:[#allocation77_spill] sm:$0xff] %v3781_v56  ;;  %v3783_v49 = vpop.f32.mrf.mxu1 }
 0x10c   : > { %4289 = vst [vmem:[#allocation78_spill] sm:$0xff] %v3783_v49 }
 0x111   : > { %v3789_v53 = vpop.f32.mrf.mxu2 }
 0x112   : > { %v3791_v5 = vpop.f32.mrf.mxu3  ;;  %v3797_v52 = vpop.f32.mrf.mxu0 }
 0x113   : > { %4290 = vst [vmem:[#allocation79_spill] sm:$0xff] %v3791_v5  ;;  %v3799_v50 = vpop.f32.mrf.mxu1 }
 0x114   : > { %4291 = vst [vmem:[#allocation80_spill] sm:$0xff] %v3799_v50 }
 0x119   : > { %v3805_v49 = vpop.f32.mrf.mxu2 }
 0x11a   : > { %v3807_v56 = vpop.f32.mrf.mxu3 }
 0x11b   : > { %4292 = vst [vmem:[#allocation81_spill] sm:$0xff] %v3807_v56 }
 0x11c LB: >> { %v4293_v5 = vld [vmem:[#allocation79_spill] sm:$0xff]  ;;  %v4294_v3 = vld [vmem:[#allocation14_spill] sm:$0xff]  ;;  %v4302_v0 = vld [vmem:[#allocation12_spill] sm:$0xff]  ;;  %vm1479_vm1 = vcmask 64512   ;;  %vm1611_vm2 = vcmask 1043456   ;;  %vm2026_vm7 = vcmask 80896   ;;  %v3018_v2 = vphi %v782_v2, %v4380_v2   ;;  %s3022_s14 = sphi %s3816_s14, %s1161_s14  }
 0x11d   : >> { %v4295_v4 = vld [vmem:[#allocation15_spill] sm:$0xff]  ;;  %v4296_v9 = vld [vmem:[#allocation18_spill] sm:$0xff]  ;;  %v4303_v1 = vld [vmem:[#allocation13_spill] sm:$0xff]  ;;  %vm2079_vm8 = vcmask 1044480   ;;  %vm2351_vm12 = vcmask 523264   ;;  %s1161_s14 = sadd.s32 1, %s3022_s14  }
 0x11e   : >> { %v2600_v8 = vor.u32 %v4295_v4, %v4294_v3  ;;  %v4297_v10 = vld [vmem:[#allocation19_spill] sm:$0xff]  ;;  %v4298_v13 = vld [vmem:[#allocation22_spill] sm:$0xff]  ;;  %v2596_v50 = vor.u32 %v4303_v1, %v4302_v0  ;;  %v4304_v6 = vld [vmem:[#allocation16_spill] sm:$0xff]  ;;  %v2632_v0 = vor.u32 %v3300_v20, %v3295_v19  ;;  %v2641_v1 = vor.u32 %v3320_v24, %v3315_v23  ;;  %p1158_p11 = scmp.ge.s32.totalorder %s1161_s14, 2  }
 0x11f   : >> { %v2609_v59 = vor.u32 %v4297_v10, %v4296_v9  ;;  %v4299_v14 = vld [vmem:[#allocation23_spill] sm:$0xff]  ;;  %v4300_v17 = vld [vmem:[#allocation26_spill] sm:$0xff]  ;;  %v4305_v7 = vld [vmem:[#allocation17_spill] sm:$0xff]  ;;  %v2636_v9 = vor.u32 %v3310_v22, %v3305_v21  ;;  %s2788_s27 = sshll.u32 (%p1158_p11), %s3171_s6, 3  ;;  %s4382_s2 = sld [smem:[#allocation98_spill]] (%p1158_p11) }
 0x120   : >> { %v2618_v60 = vor.u32 %v4299_v14, %v4298_v13  ;;  %v4301_v18 = vld [vmem:[#allocation27_spill] sm:$0xff]  ;;  %1185 = vmatpush.bf16.msra.mxu0 %v2600_v8  ;;  %v2605_v56 = vor.u32 %v4305_v7, %v4304_v6  ;;  %v4306_v11 = vld [vmem:[#allocation20_spill] sm:$0xff]  ;;  %v4307_v12 = vld [vmem:[#allocation21_spill] sm:$0xff]  ;;  %v2645_v8 = vor.u32 %v3330_v26, %v3325_v25  ;;  %s2413_s4 = sshll.u32 (%p1158_p11), %s765_s9, 4  ;;  %s4383_s7 = sand.u32 (%p1158_p11), 1, %s3006_s26   ;;  %s2414_s4 = int_to_ptr.vmem [resolvable:$true] %s2413_s4 }
 0x121   : >> { %v2627_v58 = vor.u32 %v4301_v18, %v4300_v17  ;;  %1210 = vmatpush.bf16.msra.mxu1 %v2609_v59  ;;  %v2614_v3 = vor.u32 %v4307_v12, %v4306_v11  ;;  %v4308_v15 = vld [vmem:[#allocation24_spill] sm:$0xff]  ;;  %v4309_v16 = vld [vmem:[#allocation25_spill] sm:$0xff]  ;;  %v1163_v59 = vpack.c.bf16 %v3018_v2, %v3018_v2  ;;  %s2401_s30 = scalar_lea.sflag (%p1158_p11), [#allocation3], %s4383_s7 }
 0x122   : >> { %1235 = vmatpush.bf16.msra.mxu2 %v2618_v60  ;;  %v2623_v4 = vor.u32 %v4309_v16, %v4308_v15  ;;  %v2663_v60 = vor.u32 %v3370_v34, %v3365_v33 }
 0x123   : >> { %1260 = vmatpush.bf16.msra.mxu3 %v2627_v58  ;;  %v2654_v58 = vor.u32 %v3350_v30, %v3345_v29 }
 0x124   : >> { %1186 = vmatpush.bf16.msra.mxu0 %v2596_v50  ;;  %v2681_v50 = vor.u32 %v3410_v42, %v3405_v41 }
 0x125   : >> { %1211 = vmatpush.bf16.msra.mxu1 %v2605_v56  ;;  %v2668_v56 = vor.u32 %v3380_v36, %v3375_v35  ;;  %s2411_s0 = scalar_lea.hbm (%p1158_p11), %s4382_s2, %s2788_s27  ;;  %s2964_s15 = scalar_lea.hbm (%p1158_p11), %s4382_s2, 16 }
 0x126   : >> { %1236 = vmatpush.bf16.msra.mxu2 %v2614_v3  ;;  %v2650_v3 = vor.u32 %v3340_v28, %v3335_v27  ;;  %s2415_s24 = sshll.u32 (%p1158_p11), %s2411_s0, 4  ;;  %s2416_s24 = int_to_ptr.hbm [resolvable:$true] %s2415_s24 }
 0x127   : >> { %1261 = vmatpush.bf16.msra.mxu3 %v2623_v4  ;;  %2601 = vmatmul.msk.bf16.vlgmr.msra.gmra.mxu0 %vm940_vm0, %v1163_v59  ;;  %v2659_v4 = vor.u32 %v3360_v32, %v3355_v31  ;;  %s2958_s10 = sshra.s32 (%p1158_p11), %s2416_s24, 4  ;;  %s2959_s10 = int_to_ptr.hbm [resolvable:$true] %s2958_s10 }
 0x128   : >> { %1289 = vmatpush.bf16.msrb.mxu0 %v2636_v9  ;;  %2610 = vmatmul.msk.bf16.vlgmr.msra.gmra.mxu1 %vm940_vm0, %v1163_v59  ;;  %v2672_v9 = vor.u32 %v3390_v38, %v3385_v37  ;;  %s2960_s11 = scalar_lea.hbm (%p1158_p11), %s2959_s10, 8  ;;  %p2965_p1 = scmp.lt.s32.totalorder (%p1158_p11), %s2959_s10, %s4382_s2 }
 0x129   : >> { %1314 = vmatpush.bf16.msrb.mxu1 %v2645_v8  ;;  %2619 = vmatmul.msk.bf16.vlgmr.msra.gmra.mxu2 %vm940_vm0, %v1163_v59  ;;  %v2677_v8 = vor.u32 %v3400_v40, %v3395_v39  ;;  %p2961_p12 = scmp.ne.s32.totalorder (%p1158_p11), %s2959_s10, %s2960_s11  ;;  %p2966_p2 = scmp.lt.s32.totalorder (%p1158_p11), %s2964_s15, %s2960_s11 }
 0x12a   : >> { %2628 = vmatmul.msk.bf16.vlgmr.msra.gmra.mxu3 %vm940_vm0, %v1163_v59  ;;  %1339 = vmatpush.bf16.msrb.mxu2 %v2654_v58  ;;  %v4310_v58 = vld [vmem:[#allocation30_spill] sm:$0xff] }
 0x12b   : >> { %1364 = vmatpush.bf16.msrb.mxu3 %v2663_v60  ;;  %v4311_v60 = vld [vmem:[#allocation31_spill] sm:$0xff]  ;;  %p2962_p13 = pnand (%p1158_p11), %p2961_p12, %p3188_p5  ;;  %p2967_p3 = por (%p1158_p11), %p2966_p2, %p2965_p1 }
 0x12c   : >> { %1290 = vmatpush.bf16.msrb.mxu0 %v2632_v0  ;;  %v2690_v0 = vor.u32 %v3430_v46, %v3425_v45 }
 0x12d   : >> { %1315 = vmatpush.bf16.msrb.mxu1 %v2641_v1  ;;  %v2686_v1 = vor.u32 %v3420_v44, %v3415_v43  ;;  %p2963_p0 = pneg (%p1158_p11), %p2962_p13 }
 0x12e   : >> { %1340 = vmatpush.bf16.msrb.mxu2 %v2650_v3  ;;  %v2699_v3 = vor.u32 %v4311_v60, %v4310_v58 }
 0x12f   : >> { %1365 = vmatpush.bf16.msrb.mxu3 %v2659_v4  ;;  %v4312_v4 = vld [vmem:[#allocation28_spill] sm:$0xff]  ;;  %p2968_p4 = pnand (%p1158_p11), %p2967_p3, %p2963_p0 }
 0x130   : >> { %1393 = vmatpush.bf16.msra.mxu0 %v2672_v9  ;;  %v4313_v9 = vld [vmem:[#allocation29_spill] sm:$0xff] }
 0x131   : >> { %1418 = vmatpush.bf16.msra.mxu1 %v2681_v50  ;;  %v2695_v50 = vor.u32 %v4313_v9, %v4312_v4 }
 0x132   : >> { %1443 = vmatpush.bf16.msra.mxu2 %v2690_v0 }
 0x133   : >> { %1468 = vmatpush.bf16.msra.mxu3 %v2699_v3 }
 0x134   : >> { %1394 = vmatpush.bf16.msra.mxu0 %v2668_v56 }
 0x135   : >> { %1419 = vmatpush.bf16.msra.mxu1 %v2677_v8 }
 0x136   : >> { %1444 = vmatpush.bf16.msra.mxu2 %v2686_v1 }
 0x137   : >> { %2637 = vmatmul.msk.bf16.vlgmr.msrb.gmra.mxu0 %vm940_vm0, %v1163_v59  ;;  %1469 = vmatpush.bf16.msra.mxu3 %v2695_v50 }
 0x138   : >> { %2646 = vmatmul.msk.bf16.vlgmr.msrb.gmra.mxu1 %vm940_vm0, %v1163_v59 }
 0x139   : >> { %2655 = vmatmul.msk.bf16.vlgmr.msrb.gmra.mxu2 %vm940_vm0, %v1163_v59 }
 0x13a   : >> { %2664 = vmatmul.msk.bf16.vlgmr.msrb.gmra.mxu3 %vm940_vm0, %v1163_v59 }
 0x147   : >> { %2673 = vmatmul.msk.bf16.vlgmr.msra.gmra.mxu0 %vm940_vm0, %v1163_v59 }
 0x148   : >> { %2682 = vmatmul.msk.bf16.vlgmr.msra.gmra.mxu1 %vm940_vm0, %v1163_v59 }
 0x149   : >> { %2691 = vmatmul.msk.bf16.vlgmr.msra.gmra.mxu2 %vm940_vm0, %v1163_v59 }
 0x14a   : >> { %2700 = vmatmul.msk.bf16.vlgmr.msra.gmra.mxu3 %vm940_vm0, %v1163_v59 }
 0x1a4   : >> { %v1188_v0 = vpop.f32.mrf.mxu0 }
 0x1a5   : >> { %v1213_v6 = vpop.f32.mrf.mxu1 }
 0x1a6   : >> { %v1268_v50 = vpack.c.bf16 %v1213_v6, %v1213_v6 }
 0x1ac   : >> { %v1238_v7 = vpop.f32.mrf.mxu2  ;;  %v1190_v1 = vpop.f32.mrf.mxu0 }
 0x1ad   : >> { %v1263_v58 = vpop.f32.mrf.mxu3  ;;  %v1215_v56 = vpop.f32.mrf.mxu1 }
 0x1b4   : >> { %v1240_v8 = vpop.f32.mrf.mxu2  ;;  %v1292_v3 = vpop.f32.mrf.mxu0 }
 0x1b5   : >> { %v1265_v60 = vpop.f32.mrf.mxu3  ;;  %v1317_v10 = vpop.f32.mrf.mxu1  ;;  %v1371_v11 = vpack.c.bf16 %v1292_v3, %v1292_v3  ;;  %v1267_v8 = vpack.c.bf16 %v1188_v0, %v1188_v0 }
 0x1b6   : >> { %v1372_v12 = vpack.c.bf16 %v1317_v10, %v1317_v10 }
 0x1b7   : >> { %v1484_v13 = vsel %vm1479_vm1, %v1371_v11, 0 }
 0x1b8   : >> { %v1503_v4 = vsel %vm1479_vm1, %v1372_v12, 0  ;;  %1493 = vmatpush.bf16.xpose.msrb.mxu0 %v1484_v13  ;;  %v1269_v12 = vpack.c.bf16 %v1238_v7, %v1238_v7  ;;  %v1270_v13 = vpack.c.bf16 %v1263_v58, %v1263_v58 }
 0x1b9   : >> { %1512 = vmatpush.bf16.xpose.msrb.mxu1 %v1503_v4 }
 0x1bc   : >> { %v1342_v59 = vpop.f32.mrf.mxu2  ;;  %v1294_v1 = vpop.f32.mrf.mxu0 }
 0x1bd   : >> { %v1367_v9 = vpop.f32.mrf.mxu3  ;;  %v1373_v14 = vpack.c.bf16 %v1342_v59, %v1342_v59  ;;  %v1319_v56 = vpop.f32.mrf.mxu1 }
 0x1be   : >> { %v1374_v15 = vpack.c.bf16 %v1367_v9, %v1367_v9 }
 0x1bf   : >> { %v1522_v60 = vsel %vm1479_vm1, %v1373_v14, 0  ;;  %2701 = vmatmul.msk.bf16.vlgmr.msrb.gmra.mxu0 %vm1479_vm1, %v1267_v8 }
 0x1c0   : >> { %v1541_v16 = vsel %vm1479_vm1, %v1374_v15, 0  ;;  %1531 = vmatpush.bf16.xpose.msrb.mxu2 %v1522_v60  ;;  %2702 = vmatmul.msk.bf16.vlgmr.msrb.gmra.mxu1 %vm1479_vm1, %v1268_v50 }
 0x1c1   : >> { %1550 = vmatpush.bf16.xpose.msrb.mxu3 %v1541_v16 }
 0x1c4   : >> { %v1344_v10 = vpop.f32.mrf.mxu2  ;;  %v1396_v6 = vpop.f32.mrf.mxu0 }
 0x1c5   : >> { %v1369_v11 = vpop.f32.mrf.mxu3  ;;  %v1421_v0 = vpop.f32.mrf.mxu1  ;;  %v1475_v3 = vpack.c.bf16 %v1396_v6, %v1396_v6 }
 0x1c6   : >> { %v1476_v14 = vpack.c.bf16 %v1421_v0, %v1421_v0 }
 0x1c7   : >> { %2703 = vmatmul.msk.bf16.vlgmr.msrb.gmra.mxu2 %vm1479_vm1, %v1269_v12  ;;  %v1613_v15 = vsel %vm1611_vm2, %v1475_v3, 0 }
 0x1c8   : >> { %2704 = vmatmul.msk.bf16.vlgmr.msrb.gmra.mxu3 %vm1479_vm1, %v1270_v13  ;;  %v1632_v16 = vsel %vm1611_vm2, %v1476_v14, 0  ;;  %1622 = vmatpush.bf16.msra.mxu0 %v1613_v15 }
 0x1c9   : >> { %1641 = vmatpush.bf16.msra.mxu1 %v1632_v16 }
 0x1cc   : >> { %v1446_v4 = vpop.f32.mrf.mxu2  ;;  %v1398_v9 = vpop.f32.mrf.mxu0 }
 0x1cd   : >> { %v1477_v59 = vpack.c.bf16 %v1446_v4, %v1446_v4  ;;  %v1423_v7 = vpop.f32.mrf.mxu1  ;;  %v1471_v50 = vpop.f32.mrf.mxu3 }
 0x1ce   : >> { %v1478_v1 = vpack.c.bf16 %v1471_v50, %v1471_v50 }
 0x1cf   : >> { %v1651_v58 = vsel %vm1611_vm2, %v1477_v59, 0 }
 0x1d0   : >> { %1660 = vmatpush.bf16.msra.mxu2 %v1651_v58  ;;  %v1670_v8 = vsel %vm1611_vm2, %v1478_v1, 0 }
 0x1d1   : >> { %1679 = vmatpush.bf16.msra.mxu3 %v1670_v8 }
 0x1d4   : >> { %v1448_v56 = vpop.f32.mrf.mxu2 }
 0x1d5   : >> { %v1473_v60 = vpop.f32.mrf.mxu3 }
 0x23c   : >> { %v1495_v10 = vpop.f32.mrf.mxu0 }
 0x23d   : >> { %v1514_v11 = vpop.f32.mrf.mxu1  ;;  %v1556_v12 = vmul.f32 0.35355338, %v1495_v10 }
 0x23e   : >> { %v1557_v6 = vmul.f32 0.35355338, %v1514_v11 }
 0x23f   : >> { %v1560_v13 = vadd.f32 %v1556_v12, %v3737_v48 }
 0x240   : >> { %v1561_v15 = vadd.f32 %v1557_v6, %v3737_v48 }
 0x241   : >> { %v1564_v0 = vsel %vm1479_vm1, %v1560_v13, -inf }
 0x242   : >> { %1565 = vmax.xlane.f32.xlu1 %v1564_v0  ;;  %v1567_v9 = vsel %vm1479_vm1, %v1561_v15, -inf }
 0x244   : >> { %v1497_v3 = vpop.f32.mrf.mxu0 }
 0x245   : >> { %v1516_v14 = vpop.f32.mrf.mxu1 }
 0x24a   : >> { %v1533_v16 = vpop.f32.mrf.mxu2  ;;  %1568 = vmax.xlane.f32.xlu1 %v1567_v9 }
 0x24b   : >> { %v1552_v4 = vpop.f32.mrf.mxu3  ;;  %v1558_v59 = vmul.f32 0.35355338, %v1533_v16 }
 0x24c   : >> { %v1559_v58 = vmul.f32 0.35355338, %v1552_v4 }
 0x24d   : >> { %v1562_v7 = vadd.f32 %v1558_v59, %v3737_v48 }
 0x24e   : >> { %v1563_v8 = vadd.f32 %v1559_v58, %v3737_v48 }
 0x24f   : >> { %v1570_v50 = vsel %vm1479_vm1, %v1562_v7, -inf }
 0x250   : >> { %1571 = vmax.xlane.f32.xlu0 %v1570_v50  ;;  %v1573_v60 = vsel %vm1479_vm1, %v1563_v8, -inf }
 0x252   : >> { %v1535_v1 = vpop.f32.mrf.mxu2 }
 0x253   : >> { %v1554_v56 = vpop.f32.mrf.mxu3 }
 0x258   : >> { %1574 = vmax.xlane.f32.xlu0 %v1573_v60 }
 0x2b5   : >> { %v1566_v10 = vpop.xlane.xlu1 %1565 }
 0x2b6   : >> { %v1576_v11 = vsub.f32 %v1560_v13, %v1566_v10 }
 0x2b8   : >> { %v1580_v12 = vmul.f32 1.442695, %v1576_v11 }
 0x2ba   : >> { %2904 = vpow2.f32 %v1580_v12 }
 0x2bd   : >> { %v1569_v6 = vpop.xlane.xlu1 %1568 }
 0x2be   : >> { %v1577_v0 = vsub.f32 %v1561_v15, %v1569_v6 }
 0x2c0   : >> { %v2905_v3 = vpop.eup %2904  ;;  %v1582_v14 = vmul.f32 1.442695, %v1577_v0 }
 0x2c1   : >> { %v1604_v16 = vpack.c.bf16 %v2905_v3, %v2905_v3  ;;  %v1588_v59 = vsel %vm1479_vm1, %v2905_v3, 0.0 }
 0x2c2   : >> { %2906 = vpow2.f32 %v1582_v14  ;;  %1589 = vadd.xlane.f32.xlu0 %v1588_v59  ;;  %v4315_v14 = vld [vmem:[#allocation33_spill] sm:$0xff] }
 0x2c3   : >> { %v1572_v4 = vpop.xlane.xlu0 %1571  ;;  %2705 = vmatmul.msk.bf16.vlgmr.msra.gmra.mxu0 %vm1479_vm1, %v1604_v16  ;;  %v1716_v16 = vsel %vm1611_vm2, %v4315_v14, 0 }
 0x2c4   : >> { %v1578_v9 = vsub.f32 %v1562_v7, %v1572_v4  ;;  %1725 = vmatpush.bf16.msrb.mxu1 %v1716_v16  ;;  %v4316_v4 = vld [vmem:[#allocation34_spill] sm:$0xff] }
 0x2c5   : >> { %v1735_v59 = vsel %vm1611_vm2, %v4316_v4, 0 }
 0x2c6   : >> { %v1584_v58 = vmul.f32 1.442695, %v1578_v9  ;;  %1744 = vmatpush.bf16.msrb.mxu2 %v1735_v59 }
 0x2c8   : >> { %2908 = vpow2.f32 %v1584_v58  ;;  %v2907_v50 = vpop.eup %2906  ;;  %v4317_v58 = vld [vmem:[#allocation35_spill] sm:$0xff] }
 0x2c9   : >> { %v1605_v1 = vpack.c.bf16 %v2907_v50, %v2907_v50  ;;  %v1591_v56 = vsel %vm1479_vm1, %v2907_v50, 0.0  ;;  %v1754_v50 = vsel %vm1611_vm2, %v4317_v58, 0 }
 0x2ca   : >> { %1592 = vadd.xlane.f32.xlu1 %v1591_v56  ;;  %1763 = vmatpush.bf16.msrb.mxu3 %v1754_v50 }
 0x2cb   : >> { %v1575_v13 = vpop.xlane.xlu0 %1574  ;;  %2706 = vmatmul.msk.bf16.vlgmr.msra.gmra.mxu1 %vm1479_vm1, %v1605_v1 }
 0x2cc   : >> { %v1579_v60 = vsub.f32 %v1563_v8, %v1575_v13  ;;  %v4314_v8 = vld [vmem:[#allocation32_spill] sm:$0xff] }
 0x2cd   : >> { %v1697_v3 = vsel %vm1611_vm2, %v4314_v8, 0 }
 0x2ce   : >> { %v2909_v15 = vpop.eup %2908  ;;  %v1586_v10 = vmul.f32 1.442695, %v1579_v60  ;;  %1706 = vmatpush.bf16.msrb.mxu0 %v1697_v3 }
 0x2cf   : >> { %v1606_v11 = vpack.c.bf16 %v2909_v15, %v2909_v15  ;;  %v1594_v12 = vsel %vm1479_vm1, %v2909_v15, 0.0 }
 0x2d0   : >> { %2910 = vpow2.f32 %v1586_v10  ;;  %1595 = vadd.xlane.f32.xlu2 %v1594_v12 }
 0x2d1   : >> { %2707 = vmatmul.msk.bf16.vlgmr.msra.gmra.mxu2 %vm1479_vm1, %v1606_v11 }
 0x2d6   : >> { %v2911_v7 = vpop.eup %2910 }
 0x2d7   : >> { %v1607_v6 = vpack.c.bf16 %v2911_v7, %v2911_v7  ;;  %v1597_v0 = vsel %vm1479_vm1, %v2911_v7, 0.0 }
 0x2d8   : >> { %1598 = vadd.xlane.f32.xlu2 %v1597_v0 }
 0x2d9   : >> { %2708 = vmatmul.msk.bf16.vlgmr.msra.gmra.mxu3 %vm1479_vm1, %v1607_v6 }
 0x335   : >> { %v1590_v9 = vpop.xlane.xlu0 %1589 }
 0x336   : >> { %2912 = vrcp.f32 %v1590_v9 }
 0x33c   : >> { %v2913_v13 = vpop.eup %2912 }
 0x33d   : >> { %v1593_v1 = vpop.xlane.xlu1 %1592 }
 0x33e   : >> { %2914 = vrcp.f32 %v1593_v1 }
 0x340   : >> { %v1624_v56 = vpop.f32.mrf.mxu0 }
 0x341   : >> { %v1685_v60 = vmul.f32 %v2913_v13, %v1624_v56 }
 0x343   : >> { %v1689_v15 = vpack.c.bf16 %v1685_v60, %v1685_v60  ;;  %v1596_v10 = vpop.xlane.xlu2 %1595 }
 0x344   : >> { %v2915_v11 = vpop.eup %2914  ;;  %2916 = vrcp.f32 %v1596_v10 }
 0x345   : >> { %2709 = vmatmul.msk.bf16.vlgmr.msrb.gmra.mxu0 %vm1479_vm1, %v1689_v15 }
 0x348   : >> { %v1626_v12 = vpop.f32.mrf.mxu0  ;;  %v1643_v7 = vpop.f32.mrf.mxu1 }
 0x349   : >> { %v1686_v6 = vmul.f32 %v2915_v11, %v1643_v7 }
 0x34a   : >> { %v2917_v14 = vpop.eup %2916 }
 0x34b   : >> { %v1690_v0 = vpack.c.bf16 %v1686_v6, %v1686_v6  ;;  %v1599_v3 = vpop.xlane.xlu2 %1598 }
 0x34c   : >> { %2918 = vrcp.f32 %v1599_v3 }
 0x34d   : >> { %2710 = vmatmul.msk.bf16.vlgmr.msrb.gmra.mxu1 %vm1479_vm1, %v1690_v0 }
 0x350   : >> { %v1645_v8 = vpop.f32.mrf.mxu1 }
 0x352   : >> { %v2919_v9 = vpop.eup %2918 }
 0x354   : >> { %v1662_v16 = vpop.f32.mrf.mxu2 }
 0x355   : >> { %v1687_v4 = vmul.f32 %v2917_v14, %v1662_v16 }
 0x357   : >> { %v1691_v59 = vpack.c.bf16 %v1687_v4, %v1687_v4 }
 0x359   : >> { %2711 = vmatmul.msk.bf16.vlgmr.msrb.gmra.mxu2 %vm1479_vm1, %v1691_v59 }
 0x35c   : >> { %v1664_v58 = vpop.f32.mrf.mxu2  ;;  %v1681_v50 = vpop.f32.mrf.mxu3 }
 0x35d   : >> { %v1688_v1 = vmul.f32 %v2919_v9, %v1681_v50 }
 0x35f   : >> { %v1692_v13 = vpack.c.bf16 %v1688_v1, %v1688_v1  ;;  %v3024_v1 = vmov 32.0  }
 0x360   : >> { %2920 = vrcp.f32 %v3024_v1 }
 0x361   : >> { %2712 = vmatmul.msk.bf16.vlgmr.msrb.gmra.mxu3 %vm1479_vm1, %v1692_v13 }
 0x364   : >> { %v1683_v56 = vpop.f32.mrf.mxu3 }
 0x366   : >> { %v2921_v13 = vpop.eup %2920 }
 0x367   : >> { %v1781_v56 = vmul.f32 32.0, %v2921_v13  ;;  %vm1785_vm3 = vweird.f32 %v2921_v13 }
 0x3c2   : >> { %v1708_v60 = vpop.f32.mrf.mxu0 }
 0x3c3   : >> { %v1769_v6 = vsel %vm940_vm0, %v1708_v60, 0.0  ;;  %v1782_v60 = vsub.f32 1.0, %v1781_v56  ;;  %v4324_v56 = vld [vmem:[#allocation50_spill] sm:$0xff] }
 0x3ca   : >> { %v1710_v15 = vpop.f32.mrf.mxu0  ;;  %v1727_v10 = vpop.f32.mrf.mxu1 }
 0x3cb   : >> { %v1770_v7 = vsel %vm940_vm0, %v1727_v10, 0.0  ;;  %v1783_v15 = vmul.f32 %v2921_v13, %v1782_v60 }
 0x3cc   : >> { %v1771_v8 = vadd.f32 %v1770_v7, %v1769_v6 }
 0x3cd   : >> { %v1784_v10 = vadd.f32 %v2921_v13, %v1783_v15  ;;  %v4326_v15 = vld [vmem:[#allocation36_spill] sm:$0xff] }
 0x3d2   : >> { %v1729_v11 = vpop.f32.mrf.mxu1 }
 0x3d3   : >> { %v3932_v11 = vsel %vm1785_vm3, %v2921_v13, %v1784_v10  ;;  %v4325_v13 = vld [vmem:[#allocation51_spill] sm:$0xff] }
 0x3d4   : >> { %v2747_v60 = vor.u32 %v4325_v13, %v4324_v56  ;;  %v4336_v56 = vpack.c.bf16 %v3751_v47, %v3751_v47 }
 0x3d6   : >> { %1911 = vmatpush.bf16.msra.mxu3 %v2747_v60  ;;  %v1948_v13 = vunpack.c.l.b16 %v4336_v56  ;;  %v4337_v60 = vpack.c.bf16 %v3767_v62, %v3767_v62  ;;  %v4339_v56 = vld [vmem:[#allocation57_spill] sm:$0xff] }
 0x3dc   : >> { %v1746_v12 = vpop.f32.mrf.mxu2 }
 0x3dd   : >> { %v1772_v0 = vsel %vm940_vm0, %v1746_v12, 0.0 }
 0x3de   : >> { %v1773_v3 = vadd.f32 %v1772_v0, %v1771_v8  ;;  %v4318_v8 = vld [vmem:[#allocation38_spill] sm:$0xff] }
 0x3e4   : >> { %v1748_v14 = vpop.f32.mrf.mxu2  ;;  %v1765_v16 = vpop.f32.mrf.mxu3 }
 0x3e5   : >> { %v1774_v4 = vsel %vm940_vm0, %v1765_v16, 0.0  ;;  %v4320_v16 = vld [vmem:[#allocation42_spill] sm:$0xff] }
 0x3e6   : >> { %v1775_v59 = vadd.f32 %v1774_v4, %v1773_v3  ;;  %v4319_v3 = vld [vmem:[#allocation39_spill] sm:$0xff] }
 0x3e7   : >> { %v2720_v14 = vor.u32 %v4319_v3, %v4318_v8  ;;  %v4321_v4 = vld [vmem:[#allocation43_spill] sm:$0xff]  ;;  %v4331_v8 = vld [vmem:[#allocation45_spill] sm:$0xff] }
 0x3e8   : >> { %v1776_v9 = vadd.f32 %v3018_v2, %v1775_v59  ;;  %v2729_v59 = vor.u32 %v4321_v4, %v4320_v16  ;;  %v4332_v16 = vld [vmem:[#allocation48_spill] sm:$0xff]  ;;  %v4333_v4 = vld [vmem:[#allocation49_spill] sm:$0xff] }
 0x3e9   : >> { %1836 = vmatpush.bf16.msra.mxu0 %v2720_v14  ;;  %v2743_v17 = vor.u32 %v4333_v4, %v4332_v16 }
 0x3ea   : >> { %v1777_v58 = vsel %vm940_vm0, %v1776_v9, 0.0  ;;  %1861 = vmatpush.bf16.msra.mxu1 %v2729_v59  ;;  %v4334_v59 = vpack.c.bf16 %v3749_v51, %v3749_v51 }
 0x3eb   : >> { %1778 = vadd.xlane.f32.xlu2 %v1777_v58  ;;  %v4322_v58 = vld [vmem:[#allocation46_spill] sm:$0xff]  ;;  %1912 = vmatpush.bf16.msra.mxu3 %v2743_v17 }
 0x3ec   : >> { %v1767_v50 = vpop.f32.mrf.mxu3 }
 0x3ed   : >> { %v4323_v50 = vld [vmem:[#allocation47_spill] sm:$0xff] }
 0x3ee   : >> { %v2738_v1 = vor.u32 %v4323_v50, %v4322_v58  ;;  %v1924_v58 = vunpack.c.l.b16 %v4334_v59  ;;  %v4335_v50 = vpack.c.bf16 %v3765_v61, %v3765_v61 }
 0x3f0   : >> { %1886 = vmatpush.bf16.msra.mxu2 %v2738_v1  ;;  %v1925_v1 = vunpack.c.l.b16 %v4335_v50 }
 0x3f2   : >> { %v1926_v17 = vpack.c.b16 %v1925_v1, %v1924_v58 }
 0x45e   : >> { %v1779_v12 = vpop.xlane.xlu2 %1778 }
 0x45f   : >> { %v1787_v7 = vmul.f32 %v3932_v11, %v1779_v12  ;;  %v4328_v12 = vld [vmem:[#allocation40_spill] sm:$0xff] }
 0x461   : >> { %v1788_v6 = vsub.f32 %v1776_v9, %v1787_v7  ;;  %v4327_v9 = vld [vmem:[#allocation37_spill] sm:$0xff] }
 0x462   : >> { %v2716_v10 = vor.u32 %v4327_v9, %v4326_v15  ;;  %v4329_v7 = vld [vmem:[#allocation41_spill] sm:$0xff]  ;;  %v1949_v15 = vunpack.c.l.b16 %v4337_v60 }
 0x463   : >> { %v1789_v0 = vmul.f32 %v1788_v6, %v1788_v6 }
 0x464   : >> { %1837 = vmatpush.bf16.msra.mxu0 %v2716_v10  ;;  %v1950_v10 = vpack.c.b16 %v1949_v15, %v1948_v13  ;;  %v1811_v13 = vperm.slane %v4339_v56, 0 }
 0x465   : >> { %v1790_v2 = vsel %vm940_vm0, %v1789_v0, 0.0  ;;  %v2725_v0 = vor.u32 %v4329_v7, %v4328_v12  ;;  %v1931_v7 = vsel %vm1479_vm1, %v1926_v17, 0  ;;  %v4340_v17 = vpack.c.bf16 %v3757_v54, %v3757_v54 }
 0x466   : >> { %1791 = vadd.xlane.f32.xlu0 %v1790_v2  ;;  %v4330_v2 = vld [vmem:[#allocation44_spill] sm:$0xff] }
 0x467   : >> { %v2734_v3 = vor.u32 %v4331_v8, %v4330_v2  ;;  %1862 = vmatpush.bf16.msra.mxu1 %v2725_v0  ;;  %v1955_v0 = vsel %vm1479_vm1, %v1950_v10, 0  ;;  %v4341_v10 = vpack.c.bf16 %v3773_v55, %v3773_v55 }
 0x468   : >> { %1940 = vmatpush.bf16.xpose.msrb.mxu0 %v1931_v7  ;;  %v4342_v7 = vpack.c.bf16 %v3759_v57, %v3759_v57 }
 0x469   : >> { %1887 = vmatpush.bf16.msra.mxu2 %v2734_v3 }
 0x46b   : >> { %1964 = vmatpush.bf16.xpose.msrb.mxu1 %v1955_v0  ;;  %v1996_v0 = vunpack.c.l.b16 %v4342_v7 }
 0x4d9   : >> { %v1792_v14 = vpop.xlane.xlu0 %1791 }
 0x4da   : >> { %v1793_v9 = vmul.f32 %v1792_v14, %v3932_v11  ;;  %v4338_v14 = vld [vmem:[#allocation56_spill] sm:$0xff] }
 0x4db   : >> { %v1807_v58 = vperm.slane %v4338_v14, 0 }
 0x4dc   : >> { %v1794_v12 = vadd.f32 1e-05, %v1793_v9 }
 0x4de   : >> { %2922 = vrsqrt.f32 %v1794_v12  ;;  %vm1801_vm5 = vweird.f32 %v1794_v12 }
 0x4e4   : >> { %v2923_v2 = vpop.eup %2922 }
 0x4e5   : >> { %v1796_v8 = vmul.f32 %v2923_v2, %v1794_v12  ;;  %vm1802_vm4 = vweird.f32 %v2923_v2  ;;  %v1973_v12 = vunpack.c.l.b16 %v4341_v10 }
 0x4e6   : >> { %vm1803_vm6 = vmor %vm1801_vm5, %vm1802_vm4 }
 0x4e7   : >> { %v1797_v3 = vmul.f32 %v2923_v2, %v1796_v8 }
 0x4e9   : >> { %v1798_v16 = vmul.f32 0.5, %v1797_v3 }
 0x4eb   : >> { %v1799_v4 = vsub.f32 1.5, %v1798_v16 }
 0x4ed   : >> { %v1800_v59 = vmul.f32 %v2923_v2, %v1799_v4 }
 0x4ef   : >> { %v1804_v50 = vsel %vm1803_vm6, %v2923_v2, %v1800_v59  ;;  %v4343_v2 = vpack.c.bf16 %v3775_v63, %v3775_v63 }
 0x4f0   : >> { %v1805_v1 = vmul.f32 %v1804_v50, %v1788_v6  ;;  %v1972_v6 = vunpack.c.l.b16 %v4340_v17 }
 0x4f1   : >> { %v1997_v8 = vunpack.c.l.b16 %v4343_v2 }
 0x4f2   : >> { %v1809_v60 = vmul.f32 %v1807_v58, %v1805_v1  ;;  %v1974_v3 = vpack.c.b16 %v1973_v12, %v1972_v6 }
 0x4f3   : >> { %v1998_v16 = vpack.c.b16 %v1997_v8, %v1996_v0  ;;  %v4344_v8 = vld [vmem:[#allocation76_spill] sm:$0xff] }
 0x4f4   : >> { %v3969_v15 = vadd.f32 %v1811_v13, %v1809_v60  ;;  %v1979_v4 = vsel %vm1479_vm1, %v1974_v3, 0 }
 0x4f5   : >> { %v2003_v59 = vsel %vm1479_vm1, %v1998_v16, 0  ;;  %1988 = vmatpush.bf16.xpose.msrb.mxu2 %v1979_v4 }
 0x4f6   : >> { %v1814_v9 = vpack.c.bf16 %v3969_v15, %v3969_v15  ;;  %2012 = vmatpush.bf16.xpose.msrb.mxu3 %v2003_v59 }
 0x4f8   : >> { %2721 = vmatmul.msk.bf16.vlgmr.msra.gmra.mxu0 %vm940_vm0, %v1814_v9  ;;  %2730 = vmatmul.msk.bf16.vlgmr.msra.gmra.mxu1 %vm940_vm0, %v1814_v9 }
 0x4f9   : >> { %2739 = vmatmul.msk.bf16.vlgmr.msra.gmra.mxu2 %vm940_vm0, %v1814_v9  ;;  %2748 = vmatmul.msk.bf16.vlgmr.msra.gmra.mxu3 %vm940_vm0, %v1814_v9 }
 0x575   : >> { %v1839_v14 = vpop.f32.mrf.mxu0  ;;  %v1864_v58 = vpop.f32.mrf.mxu1 }
 0x576   : >> { %v1918_v50 = vpack.c.bf16 %v1839_v14, %v1839_v14  ;;  %v1919_v1 = vpack.c.bf16 %v1864_v58, %v1864_v58 }
 0x578   : >> { %2749 = vmatmul.msk.bf16.vlgmr.msrb.gmra.mxu0 %vm1479_vm1, %v1918_v50  ;;  %2750 = vmatmul.msk.bf16.vlgmr.msrb.gmra.mxu1 %vm1479_vm1, %v1919_v1 }
 0x57c   : >> { %v1889_v56 = vpop.f32.mrf.mxu2  ;;  %v1914_v13 = vpop.f32.mrf.mxu3 }
 0x57d   : >> { %v1920_v60 = vpack.c.bf16 %v1889_v56, %v1889_v56  ;;  %v1921_v9 = vpack.c.bf16 %v1914_v13, %v1914_v13  ;;  %v1841_v17 = vpop.f32.mrf.mxu0  ;;  %v1866_v6 = vpop.f32.mrf.mxu1 }
 0x57f   : >> { %2751 = vmatmul.msk.bf16.vlgmr.msrb.gmra.mxu2 %vm1479_vm1, %v1920_v60  ;;  %2752 = vmatmul.msk.bf16.vlgmr.msrb.gmra.mxu3 %vm1479_vm1, %v1921_v9 }
 0x584   : >> { %v1891_v10 = vpop.f32.mrf.mxu2  ;;  %v1916_v12 = vpop.f32.mrf.mxu3 }
 0x5f5   : >> { %v1942_v7 = vpop.f32.mrf.mxu0  ;;  %v1966_v0 = vpop.f32.mrf.mxu1 }
 0x5f6   : >> { %v2018_v2 = vmul.f32 0.35355338, %v1942_v7  ;;  %v2019_v60 = vmul.f32 0.35355338, %v1966_v0  ;;  %v4348_v0 = vpack.c.bf16 %v3797_v52, %v3797_v52 }
 0x5f8   : >> { %v2022_v3 = vadd.f32 %v2018_v2, %v4344_v8  ;;  %v2023_v12 = vadd.f32 %v2019_v60, %v4344_v8  ;;  %v4345_v2 = vld [vmem:[#allocation77_spill] sm:$0xff] }
 0x5fa   : >> { %v2027_v16 = vsel %vm2026_vm7, %v2022_v3, -inf  ;;  %v2030_v7 = vsel %vm2026_vm7, %v2023_v12, -inf }
 0x5fb   : >> { %2028 = vmax.xlane.f32.xlu0 %v2027_v16  ;;  %v4346_v16 = vmov %v4345_v2 }
 0x5fd   : >> { %v1944_v4 = vpop.f32.mrf.mxu0  ;;  %v1968_v59 = vpop.f32.mrf.mxu1 }
 0x5fe   : >> { %v4347_v4 = vpack.c.bf16 %v4345_v2, %v4346_v16 }
 0x600   : >> { %v2073_v59 = vunpack.c.l.b16 %v4347_v4 }
 0x602   : >> { %v1990_v14 = vpop.f32.mrf.mxu2  ;;  %v2014_v58 = vpop.f32.mrf.mxu3 }
 0x603   : >> { %v2020_v50 = vmul.f32 0.35355338, %v1990_v14  ;;  %v2021_v1 = vmul.f32 0.35355338, %v2014_v58  ;;  %v2074_v14 = vunpack.c.l.b16 %v4348_v0 }
 0x605   : >> { %v2024_v56 = vadd.f32 %v2020_v50, %v4344_v8  ;;  %v2025_v13 = vadd.f32 %v2021_v1, %v4344_v8  ;;  %v2075_v58 = vpack.c.b16 %v2074_v14, %v2073_v59  ;;  %v4349_v1 = vpack.c.bf16 %v3789_v53, %v3789_v53  ;;  %v4356_v8 = vld [vmem:[#allocation80_spill] sm:$0xff] }
 0x607   : >> { %v2036_v9 = vsel %vm2026_vm7, %v2025_v13, -inf  ;;  %v2033_v17 = vsel %vm2026_vm7, %v2024_v56, -inf  ;;  %v2081_v50 = vsel %vm2079_vm8, %v2075_v58, 0  ;;  %v2122_v60 = vunpack.c.l.b16 %v4349_v1 }
 0x608   : >> { %2037 = vmax.xlane.f32.xlu2 %v2036_v9  ;;  %2034 = vmax.xlane.f32.xlu1 %v2033_v17  ;;  %v4350_v9 = vpack.c.bf16 %v3805_v49, %v3805_v49 }
 0x609   : >> { %2090 = vmatpush.bf16.msra.mxu0 %v2081_v50  ;;  %v4354_v50 = vld [vmem:[#allocation78_spill] sm:$0xff] }
 0x60a   : >> { %v1992_v6 = vpop.f32.mrf.mxu2  ;;  %v2016_v10 = vpop.f32.mrf.mxu3  ;;  %v2123_v17 = vunpack.c.l.b16 %v4350_v9  ;;  %v4355_v1 = vpack.c.bf16 %v4354_v50, %v4354_v50 }
 0x60b   : >> { %v4351_v6 = vpack.c.bf16 %v4293_v5, %v4293_v5  ;;  %v4357_v5 = vpack.c.bf16 %v4356_v8, %v4356_v8 }
 0x60c   : >> { %v2124_v59 = vpack.c.b16 %v2123_v17, %v2122_v60  ;;  %v2098_v9 = vunpack.c.l.b16 %v4355_v1 }
 0x60d   : >> { %v2146_v10 = vunpack.c.l.b16 %v4351_v6  ;;  %v2099_v6 = vunpack.c.l.b16 %v4357_v5 }
 0x60e   : >> { %v2129_v14 = vsel %vm2079_vm8, %v2124_v59, 0 }
 0x60f   : >> { %2138 = vmatpush.bf16.msra.mxu2 %v2129_v14  ;;  %v2100_v16 = vpack.c.b16 %v2099_v6, %v2098_v9 }
 0x610   : >> { %2031 = vmax.xlane.f32.xlu1 %v2030_v7  ;;  %v4352_v7 = vld [vmem:[#allocation81_spill] sm:$0xff] }
 0x611   : >> { %v4353_v2 = vpack.c.bf16 %v4352_v7, %v4352_v7 }
 0x613   : >> { %v2147_v4 = vunpack.c.l.b16 %v4353_v2  ;;  %v2105_v2 = vsel %vm2079_vm8, %v2100_v16, 0 }
 0x614   : >> { %2114 = vmatpush.bf16.msra.mxu1 %v2105_v2 }
 0x615   : >> { %v2148_v0 = vpack.c.b16 %v2147_v4, %v2146_v10 }
 0x617   : >> { %v2153_v58 = vsel %vm2079_vm8, %v2148_v0, 0 }
 0x618   : >> { %2162 = vmatpush.bf16.msra.mxu3 %v2153_v58 }
 0x66e   : >> { %v2029_v18 = vpop.xlane.xlu0 %2028 }
 0x66f   : >> { %v2039_v60 = vsub.f32 %v2022_v3, %v2029_v18 }
 0x671   : >> { %v2043_v17 = vmul.f32 1.442695, %v2039_v60 }
 0x673   : >> { %2924 = vpow2.f32 %v2043_v17 }
 0x679   : >> { %v2925_v10 = vpop.eup %2924 }
 0x67a   : >> { %v2067_v4 = vpack.c.bf16 %v2925_v10, %v2925_v10  ;;  %v2051_v59 = vsel %vm2026_vm7, %v2925_v10, 0.0 }
 0x67b   : >> { %v2038_v0 = vpop.xlane.xlu2 %2037  ;;  %v2035_v14 = vpop.xlane.xlu1 %2034  ;;  %2052 = vadd.xlane.f32.xlu1 %v2051_v59 }
 0x67c   : >> { %v2042_v58 = vsub.f32 %v2025_v13, %v2038_v0  ;;  %v2041_v1 = vsub.f32 %v2024_v56, %v2035_v14  ;;  %2753 = vmatmul.msk.bf16.vlgmr.msra.gmra.mxu0 %vm2026_vm7, %v2067_v4  ;;  %v4358_v4 = vld [vmem:[#allocation52_spill] sm:$0xff]  ;;  %v4359_v14 = vld [vmem:[#allocation54_spill] sm:$0xff] }
 0x67d   : >> { %v2180_v0 = vsel %vm1611_vm2, %v4358_v4, 0 }
 0x67e   : >> { %v2049_v5 = vmul.f32 1.442695, %v2042_v58  ;;  %v2047_v9 = vmul.f32 1.442695, %v2041_v1  ;;  %2189 = vmatpush.bf16.msrb.mxu0 %v2180_v0  ;;  %v2218_v58 = vsel %vm1611_vm2, %v4359_v14, 0  ;;  %v4360_v1 = vld [vmem:[#allocation55_spill] sm:$0xff] }
 0x67f   : >> { %2227 = vmatpush.bf16.msrb.mxu2 %v2218_v58 }
 0x680   : >> { %2926 = vpow2.f32 %v2049_v5  ;;  %v2237_v5 = vsel %vm1611_vm2, %v4360_v1, 0 }
 0x681   : >> { %2928 = vpow2.f32 %v2047_v9  ;;  %2246 = vmatpush.bf16.msrb.mxu3 %v2237_v5 }
 0x683   : >> { %v2032_v16 = vpop.xlane.xlu1 %2031 }
 0x684   : >> { %v2040_v18 = vsub.f32 %v2023_v12, %v2032_v16  ;;  %v4361_v16 = vld [vmem:[#allocation53_spill] sm:$0xff] }
 0x686   : >> { %v2927_v3 = vpop.eup %2926  ;;  %v2045_v6 = vmul.f32 1.442695, %v2040_v18  ;;  %v2199_v18 = vsel %vm1611_vm2, %v4361_v16, 0 }
 0x687   : >> { %v2929_v2 = vpop.eup %2928  ;;  %v2070_v60 = vpack.c.bf16 %v2927_v3, %v2927_v3  ;;  %v2060_v17 = vsel %vm2026_vm7, %v2927_v3, 0.0  ;;  %2208 = vmatpush.bf16.msrb.mxu1 %v2199_v18 }
 0x688   : >> { %v2069_v10 = vpack.c.bf16 %v2929_v2, %v2929_v2  ;;  %2930 = vpow2.f32 %v2045_v6  ;;  %v2057_v59 = vsel %vm2026_vm7, %v2929_v2, 0.0  ;;  %2061 = vadd.xlane.f32.xlu0 %v2060_v17 }
 0x689   : >> { %2058 = vadd.xlane.f32.xlu2 %v2057_v59  ;;  %2756 = vmatmul.msk.bf16.vlgmr.msra.gmra.mxu3 %vm2026_vm7, %v2070_v60 }
 0x68a   : >> { %2755 = vmatmul.msk.bf16.vlgmr.msra.gmra.mxu2 %vm2026_vm7, %v2069_v10 }
 0x68e   : >> { %v2931_v56 = vpop.eup %2930 }
 0x68f   : >> { %v2068_v13 = vpack.c.bf16 %v2931_v56, %v2931_v56  ;;  %v2054_v12 = vsel %vm2026_vm7, %v2931_v56, 0.0 }
 0x691   : >> { %2055 = vadd.xlane.f32.xlu2 %v2054_v12  ;;  %2754 = vmatmul.msk.bf16.vlgmr.msra.gmra.mxu1 %vm2026_vm7, %v2068_v13 }
 0x6ee   : >> { %v2053_v9 = vpop.xlane.xlu1 %2052 }
 0x6ef   : >> { %2932 = vrcp.f32 %v2053_v9 }
 0x6f5   : >> { %v2933_v3 = vpop.eup %2932 }
 0x6f9   : >> { %v2092_v6 = vpop.f32.mrf.mxu0 }
 0x6fa   : >> { %v2168_v2 = vmul.f32 %v2933_v3, %v2092_v6 }
 0x6fb   : >> { %v2062_v59 = vpop.xlane.xlu0 %2061 }
 0x6fc   : >> { %v2172_v60 = vpack.c.bf16 %v2168_v2, %v2168_v2  ;;  %v2059_v17 = vpop.xlane.xlu2 %2058  ;;  %2934 = vrcp.f32 %v2062_v59 }
 0x6fd   : >> { %2936 = vrcp.f32 %v2059_v17 }
 0x6fe   : >> { %2757 = vmatmul.msk.bf16.vlgmr.msrb.gmra.mxu0 %vm1479_vm1, %v2172_v60 }
 0x701   : >> { %v2094_v10 = vpop.f32.mrf.mxu0 }
 0x702   : >> { %v2935_v13 = vpop.eup %2934 }
 0x703   : >> { %v2937_v4 = vpop.eup %2936 }
 0x704   : >> { %v2056_v56 = vpop.xlane.xlu2 %2055 }
 0x705   : >> { %2938 = vrcp.f32 %v2056_v56 }
 0x70b   : >> { %v2939_v58 = vpop.eup %2938 }
 0x70c   : >> { %v2164_v12 = vpop.f32.mrf.mxu3 }
 0x70d   : >> { %v2140_v0 = vpop.f32.mrf.mxu2  ;;  %v2171_v14 = vmul.f32 %v2935_v13, %v2164_v12 }
 0x70e   : >> { %v2170_v1 = vmul.f32 %v2937_v4, %v2140_v0  ;;  %v2116_v5 = vpop.f32.mrf.mxu1 }
 0x70f   : >> { %v2175_v9 = vpack.c.bf16 %v2171_v14, %v2171_v14  ;;  %v2169_v16 = vmul.f32 %v2939_v58, %v2116_v5 }
 0x710   : >> { %v2174_v18 = vpack.c.bf16 %v2170_v1, %v2170_v1 }
 0x711   : >> { %v2173_v3 = vpack.c.bf16 %v2169_v16, %v2169_v16  ;;  %2760 = vmatmul.msk.bf16.vlgmr.msrb.gmra.mxu3 %vm1479_vm1, %v2175_v9 }
 0x712   : >> { %2759 = vmatmul.msk.bf16.vlgmr.msrb.gmra.mxu2 %vm1479_vm1, %v2174_v18 }
 0x713   : >> { %2758 = vmatmul.msk.bf16.vlgmr.msrb.gmra.mxu1 %vm1479_vm1, %v2173_v3 }
 0x714   : >> { %v2166_v6 = vpop.f32.mrf.mxu3 }
 0x715   : >> { %v2142_v2 = vpop.f32.mrf.mxu2 }
 0x716   : >> { %v2118_v60 = vpop.f32.mrf.mxu1 }
 0x77b   : >> { %v2191_v17 = vpop.f32.mrf.mxu0 }
 0x77c   : >> { %v2252_v13 = vsel %vm940_vm0, %v2191_v17, 0.0 }
 0x783   : >> { %v2193_v10 = vpop.f32.mrf.mxu0 }
 0x790   : >> { %v2210_v59 = vpop.f32.mrf.mxu1 }
 0x791   : >> { %v2253_v56 = vsel %vm940_vm0, %v2210_v59, 0.0 }
 0x792   : >> { %v2254_v4 = vadd.f32 %v2253_v56, %v2252_v13  ;;  %v4362_v56 = vld [vmem:[#allocation64_spill] sm:$0xff]  ;;  %v4363_v13 = vld [vmem:[#allocation65_spill] sm:$0xff] }
 0x794   : >> { %v2248_v12 = vpop.f32.mrf.mxu3 }
 0x795   : >> { %v2229_v0 = vpop.f32.mrf.mxu2  ;;  %v2257_v1 = vsel %vm940_vm0, %v2248_v12, 0.0  ;;  %v2768_v12 = vor.u32 %v4363_v13, %v4362_v56 }
 0x796   : >> { %v2255_v14 = vsel %vm940_vm0, %v2229_v0, 0.0  ;;  %v4365_v0 = vld [vmem:[#allocation63_spill] sm:$0xff] }
 0x797   : >> { %v2256_v58 = vadd.f32 %v2255_v14, %v2254_v4  ;;  %2315 = vmatpush.bf16.msra.mxu0 %v2768_v12  ;;  %v4364_v4 = vld [vmem:[#allocation62_spill] sm:$0xff]  ;;  %v4366_v14 = vld [vmem:[#allocation73_spill] sm:$0xff] }
 0x798   : >> { %v2212_v5 = vpop.f32.mrf.mxu1  ;;  %v4370_v12 = vld [vmem:[#allocation58_spill] sm:$0xff] }
 0x799   : >> { %v2258_v9 = vadd.f32 %v2257_v1, %v2256_v58  ;;  %v4367_v58 = vld [vmem:[#allocation74_spill] sm:$0xff] }
 0x79a   : >> { %v2785_v1 = vor.u32 %v4367_v58, %v4366_v14  ;;  %v4371_v14 = vld [vmem:[#allocation59_spill] sm:$0xff] }
 0x79b   : >> { %v2259_v16 = vadd.f32 %v2258_v9, %v3969_v15  ;;  %v2764_v15 = vor.u32 %v4365_v0, %v4364_v4  ;;  %v2283_v4 = vperm.slane %v4370_v12, 0  ;;  %v2287_v58 = vperm.slane %v4371_v14, 0 }
 0x79c   : >> { %v2250_v18 = vpop.f32.mrf.mxu3  ;;  %2359 = vmatpush.bf16.msra.mxu1 %v2785_v1 }
 0x79d   : >> { %v2231_v3 = vpop.f32.mrf.mxu2  ;;  %v2260_v6 = vsel %vm940_vm0, %v2259_v16, 0.0  ;;  %2316 = vmatpush.bf16.msra.mxu0 %v2764_v15  ;;  %v4369_v18 = vld [vmem:[#allocation72_spill] sm:$0xff] }
 0x79e   : >> { %2261 = vadd.xlane.f32.xlu0 %v2260_v6 }
 0x811   : >> { %v2262_v2 = vpop.xlane.xlu0 %2261 }
 0x812   : >> { %v2263_v60 = vmul.f32 %v2262_v2, %v3932_v11 }
 0x814   : >> { %v2264_v17 = vsub.f32 %v2259_v16, %v2263_v60  ;;  %v4368_v16 = vld [vmem:[#allocation71_spill] sm:$0xff] }
 0x815   : >> { %v2781_v3 = vor.u32 %v4369_v18, %v4368_v16  ;;  %v4372_v16 = vld [vmem:[#allocation69_spill] sm:$0xff]  ;;  %v4373_v18 = vld [vmem:[#allocation70_spill] sm:$0xff] }
 0x816   : >> { %v2265_v10 = vmul.f32 %v2264_v17, %v2264_v17 }
 0x817   : >> { %2360 = vmatpush.bf16.msra.mxu1 %v2781_v3  ;;  %v2777_v3 = vor.u32 %v4373_v18, %v4372_v16 }
 0x818   : >> { %v2266_v59 = vsel %vm940_vm0, %v2265_v10, 0.0 }
 0x819   : >> { %2267 = vadd.xlane.f32.xlu1 %v2266_v59 }
 0x81b   : >> { %2361 = vmatpush.bf16.msra.mxu1 %v2777_v3 }
 0x88c   : >> { %v2268_v5 = vpop.xlane.xlu1 %2267 }
 0x88d   : >> { %v2269_v9 = vmul.f32 %v2268_v5, %v3932_v11 }
 0x88f   : >> { %v2270_v6 = vadd.f32 1e-05, %v2269_v9 }
 0x891   : >> { %2940 = vrsqrt.f32 %v2270_v6  ;;  %vm2277_vm10 = vweird.f32 %v2270_v6 }
 0x897   : >> { %v2941_v2 = vpop.eup %2940 }
 0x898   : >> { %v2272_v60 = vmul.f32 %v2941_v2, %v2270_v6  ;;  %vm2278_vm9 = vweird.f32 %v2941_v2  ;;  %v4376_v6 = vld [vmem:[#allocation66_spill] sm:$0xff] }
 0x899   : >> { %vm2279_vm11 = vmor %vm2277_vm10, %vm2278_vm9 }
 0x89a   : >> { %v2273_v10 = vmul.f32 %v2941_v2, %v2272_v60  ;;  %v4374_v60 = vld [vmem:[#allocation67_spill] sm:$0xff] }
 0x89c   : >> { %v2274_v59 = vmul.f32 0.5, %v2273_v10  ;;  %v4375_v10 = vld [vmem:[#allocation68_spill] sm:$0xff] }
 0x89e   : >> { %v2275_v56 = vsub.f32 1.5, %v2274_v59  ;;  %v2773_v59 = vor.u32 %v4375_v10, %v4374_v60 }
 0x8a0   : >> { %v2276_v13 = vmul.f32 %v2941_v2, %v2275_v56  ;;  %2362 = vmatpush.bf16.msra.mxu1 %v2773_v59  ;;  %v2292_v56 = vperm.slane %v4376_v6, 0 }
 0x8a2   : >> { %v2280_v0 = vsel %vm2279_vm11, %v2941_v2, %v2276_v13 }
 0x8a3   : >> { %v2281_v15 = vmul.f32 %v2280_v0, %v2264_v17  ;;  %v4377_v0 = vld [vmem:[#allocation75_spill] sm:$0xff] }
 0x8a5   : >> { %v2285_v1 = vmul.f32 %v2283_v4, %v2281_v15  ;;  %v2325_v15 = vperm.slane %v4377_v0, 0 }
 0x8a7   : >> { %v2289_v5 = vadd.f32 %v2287_v58, %v2285_v1 }
 0x8a9   : >> { %v2290_v9 = vpack.c.bf16 %v2289_v5, %v2289_v5 }
 0x8ab   : >> { %2769 = vmatmul.msk.bf16.vlgmr.msra.gmra.mxu0 %vm940_vm0, %v2290_v9 }
 0x928   : >> { %v2318_v12 = vpop.f32.mrf.mxu0 }
 0x929   : >> { %v2319_v2 = vadd.f32 %v2318_v12, %v2292_v56 }
 0x92b   : >> { %v2322_v17 = vmax.f32 %v2319_v2, 0.0 }
 0x92d   : >> { %v2323_v13 = vpack.c.bf16 %v2322_v17, %v2322_v17 }
 0x92f   : >> { %2786 = vmatmul.msk.bf16.vlgmr.msra.gmra.mxu1 %vm2351_vm12, %v2323_v13 }
 0x930   : >> { %v2320_v4 = vpop.f32.mrf.mxu0 }
 0x9ac   : >> { %v2364_v14 = vpop.f32.mrf.mxu1 }
 0x9ad   : >> { %v2365_v58 = vadd.f32 %v2364_v14, %v2325_v15  ;;  %v4378_v15 = vld [vmem:[#allocation60_spill] sm:$0xff] }
 0x9ae   : >> { %v2392_v14 = vperm.slane %v4378_v15, 0 }
 0x9af   : >> { %v2368_v1 = vadd.f32 %v2365_v58, %v2289_v5 }
 0x9b1   : >> { %v2369_v9 = vsel %vm940_vm0, %v2368_v1, 0.0 }
 0x9b2   : >> { %2370 = vadd.xlane.f32.xlu2 %v2369_v9 }
 0x9b4   : >> { %v2366_v16 = vpop.f32.mrf.mxu1 }
 0xa25   : >> { %v2371_v18 = vpop.xlane.xlu2 %2370 }
 0xa26   : >> { %v2372_v3 = vmul.f32 %v2371_v18, %v3932_v11 }
 0xa28   : >> { %v2373_v60 = vsub.f32 %v2368_v1, %v2372_v3  ;;  %v4379_v1 = vld [vmem:[#allocation61_spill] sm:$0xff] }
 0xa29   : >> { %v2396_v9 = vperm.slane %v4379_v1, 0 }
 0xa2a   : >> { %v2374_v10 = vmul.f32 %v2373_v60, %v2373_v60 }
 0xa2c   : >> { %v2375_v59 = vsel %vm940_vm0, %v2374_v10, 0.0 }
 0xa2d   : >> { %2376 = vadd.xlane.f32.xlu0 %v2375_v59 }
 0xaa0   : >> { %v2377_v6 = vpop.xlane.xlu0 %2376 }
 0xaa1   : >> { %v2378_v56 = vmul.f32 %v2377_v6, %v3932_v11 }
 0xaa3   : >> { %v2379_v12 = vadd.f32 1e-05, %v2378_v56 }
 0xaa5   : >> { %2942 = vrsqrt.f32 %v2379_v12  ;;  %vm2386_vm14 = vweird.f32 %v2379_v12 }
 0xaab   : >> { %v2943_v2 = vpop.eup %2942 }
 0xaac   : >> { %v2381_v17 = vmul.f32 %v2943_v2, %v2379_v12  ;;  %vm2387_vm13 = vweird.f32 %v2943_v2 }
 0xaad   : >> { %vm2388_vm15 = vmor %vm2386_vm14, %vm2387_vm13 }
 0xaae   : >> { %v2382_v5 = vmul.f32 %v2943_v2, %v2381_v17 }
 0xab0   : >> { %v2383_v13 = vmul.f32 0.5, %v2382_v5 }
 0xab2   : >> { %v2384_v4 = vsub.f32 1.5, %v2383_v13 }
 0xab4   : >> { %v2385_v0 = vmul.f32 %v2943_v2, %v2384_v4 }
 0xab6   : >> { %v2389_v58 = vsel %vm2388_vm15, %v2943_v2, %v2385_v0 }
 0xab7   : >> { %v2390_v16 = vmul.f32 %v2389_v58, %v2373_v60 }
 0xab9   : >> { %v2394_v18 = vmul.f32 %v2392_v14, %v2390_v16  ;;  %1160 = sbr.rel (!%p1158_p11) target bundleno = 284 (0x11c), region = 167 }
 0xabb   : >> { %v2398_v3 = vadd.f32 %v2396_v9, %v2394_v18  }
 0xabd   : >> { %v4380_v2 = vmov %v2398_v3  ;;  %2399 = vst.msk [vmem:[%s765_s9] sm:$0xff] (%p1158_p11), %vm940_vm0, %v2398_v3 }
 0xabe   : > { %2971 = shalt.err (!%p2968_p4)
}
 0xabf   : > { %2846 = dma.vmem_to_hbm [thread:$0]  (%p3188_p5), %s2414_s4, 128, %s2416_s24, %s2401_s30  }
 0xac0 PF: > { %s4384_s29 = sld [smem:[#allocation7_spill]] }
 0xac1   : > { %s4385_s3 = sld [smem:[#allocation5_spill]] }
 0xac6   : > { %p2852_p7 = scmp.ge.s32.totalorder %s4384_s29, 2 }
 0xac7   : > { %s2427_s9 = sand.u32 1, %s4385_s3  }
 0xac8   : > { %p2849_p8 = pnand %p2852_p7, %p3192_p6  ;;  %s2428_s14 = scalar_lea.sflag [#allocation3], %s2427_s9 }
 0xaca   : > { %p2850_p9 = pneg %p2849_p8 }
 0xacc   : > { %2997 = dma.done.wait (%p2850_p9), %s2428_s14, 128  }
 0xacd   : > { %2999 = vsyncadd (%p2850_p9), %s2428_s14, 4294967168  ;;  %s4387_s28 = sld [smem:[#allocation8_spill]]  ;;  %s4390_s5 = smov %s3006_s26 }
 0xace   : > { %s4388_s27 = sld [smem:[#allocation6_spill]] }
 0xacf   : > { %s4389_s8 = sld [smem:[#allocation9_spill]] }
 0xad3   : > { %p34_p10 = scmp.ge.s32.totalorder %s4387_s28, 4  }
 0xad4   : > { %s4391_s26 = smov %s4388_s27 }
 0xad5   : > { %s4392_s27 = smov %s4389_s8  ;;  %36 = sbr.rel (!%p34_p10) target bundleno = 21 (0x15), region = 178 }
 0xada   :  { %2434 = vsyncpa [#allocation3], 1 }
 0xadb   :  { %2436 = vsyncpa [#allocation3 + $0x1], 1 }

</bundles_post_ra>
